<compile_context>
chip_gen: v6e
topology: v6e:2x2x1
jax: 0.10.0
libtpu: 0.0.40
codegen_flags: <defaults>
</compile_context>

<pallas_src>
import jax
import jax.numpy as jnp
from jax.experimental import pallas as pl
from jax.experimental.pallas import tpu as pltpu

# ---- model configuration (ShallowConvNet branch) ------------------------------
CHANS = 8            # self.Chans (BaseNet hyperparameter; fc=980 is independent of it)
T = 375              # n_times; fc in_features 980 == 20 * ((375-35)//7 + 1)
KERN = 13            # temporal kernel (1, 13)
F = 20               # filters
POOL_K, POOL_S = 35, 7
P = (T - POOL_K) // POOL_S + 1       # 49 pooled time steps
NB_CLASSES = 2       # self.nb_classes
BN_EPS = 1e-5
PAD = (KERN - 1) // 2                # 'same' padding = 6

# ---- TPU tiling constants ------------------------------------------------------
FP = 32              # F padded to a bf16 sublane-pack multiple (aligned slab bands)
KC = KERN * CHANS    # 104 im2col rows
KC2 = 112            # KC + 1 (ones row for folded BN shift), padded to a multiple of 16
TW = 384             # conv/time width, lane aligned (3*128 >= pool read range)
PW = 128             # pooled width, lane aligned (>= P); extra cols stay exactly zero
OUT_W = 128          # lane-dense output width (probs live in cols [0, NB_CLASSES))

# pool must never read the invalid conv columns t >= T, and must fit in TW / PW
assert POOL_S * (P - 1) + POOL_K <= T, "pool window reads past valid conv output"
assert POOL_S * (P - 1) + POOL_K <= TW and P <= PW
assert KC2 >= KC + 1 and KC2 % 16 == 0 and FP % 16 == 0 and FP >= F


def _choose_bb(batch):
    """Samples per grid step: up to 32 (MXU M fill), multiple of 8, but keep
    >=2 grid steps when the batch allows (v7x has 2 TensorCores). v5e would
    prefer 16; 32 is still correct and VMEM-safe there."""
    half = -(-batch // 2)
    return max(8, min(32, -(-half // 8) * 8))


def _make_kernel(bb):
    def kernel(cols_ref, wc_ref, pool_ref, fcw_ref, out_ref, slab_ref):
        # cols_ref: (bb, KC2, TW) bf16 im2col (row KC is the all-ones BN-shift row)
        # wc_ref:   (FP, KC2)     bf16 folded temporal+spatial conv, BN scale+shift
        # pool_ref: (TW, PW)      bf16 averaging matrix
        # fcw_ref:  (N, FP, PW)   f32 FC weight (un-tiled)
        # slab_ref: (bb*FP, TW)   bf16 VMEM scratch holding squared activations
        wc = wc_ref[...]

        # Per-sample conv (+ folded BN) matmul -> square -> direct slab write.
        # No concatenations; slab bands start at multiples of FP=32 (bf16 aligned).
        for b in range(bb):
            y = jnp.dot(wc, cols_ref[b],
                        preferred_element_type=jnp.float32)        # (FP, TW) f32
            slab_ref[b * FP:(b + 1) * FP, :] = (y * y).astype(jnp.bfloat16)

        # AvgPool2d((1,35), stride (1,7)) as ONE MXU matmul over the whole slab.
        pooled = jnp.dot(slab_ref[...], pool_ref[...],
                         preferred_element_type=jnp.float32)        # (bb*FP, PW)
        logp = jnp.log1p(pooled).reshape(bb, FP, PW)                # pad rows/cols are 0

        # Linear(980, nb_classes, no bias): broadcast-multiply + lane/sublane reduce.
        fcw = fcw_ref[...]                                          # (N, FP, PW) f32
        ts = []
        for n in range(NB_CLASSES):
            r = jnp.sum(logp * fcw[n], axis=2)                      # (bb, FP)
            ts.append(jnp.sum(r, axis=1, keepdims=True))            # (bb, 1)
        logits = jnp.concatenate(ts, axis=1)                        # (bb, N)

        # Softmax(dim=1), written lane-dense into a (bb, 128) block.
        m = jnp.max(logits, axis=1, keepdims=True)
        e = jnp.exp(logits - m)
        probs = e / jnp.sum(e, axis=1, keepdims=True)
        out_ref[...] = jnp.concatenate(
            [probs, jnp.zeros((bb, OUT_W - NB_CLASSES), jnp.float32)],
            axis=1).astype(out_ref.dtype)

    return kernel


@jax.jit
def shallowconvnet_forward(x, params):
    """x: (B, Chans, T) -> (B, NB_CLASSES) softmax probabilities."""
    B = x.shape[0]
    bb = _choose_bb(B)
    nblk = -(-B // bb)
    Bpad = nblk * bb

    # Lane-aligned im2col built on the XLA side (cheap data rearrangement; keeps
    # every in-kernel access aligned).  Row k*CHANS + c, col t == xpad[c, t + k];
    # row KC is all ones (folded BN shift); rows > KC are zero padding.
    xpad = jnp.zeros((Bpad, CHANS, TW + KERN - 1), jnp.float32)
    xpad = xpad.at[:B, :, PAD:PAD + T].set(x.astype(jnp.float32))
    cols = jnp.stack([xpad[:, :, k:k + TW] for k in range(KERN)],
                     axis=1).reshape(Bpad, KC, TW)
    cols = jnp.concatenate(
        [cols,
         jnp.ones((Bpad, 1, TW), jnp.float32),
         jnp.zeros((Bpad, KC2 - KC - 1, TW), jnp.float32)],
        axis=1).astype(jnp.bfloat16)                                 # (Bpad, KC2, TW)

    out = pl.pallas_call(
        _make_kernel(bb),
        out_shape=jax.ShapeDtypeStruct((Bpad, OUT_W), jnp.float32),
        grid_spec=pltpu.PrefetchScalarGridSpec(
            num_scalar_prefetch=0,
            grid=(nblk,),
            in_specs=[
                pl.BlockSpec((bb, KC2, TW), lambda i: (i, 0, 0)),          # im2col block
                pl.BlockSpec((FP, KC2), lambda i: (0, 0)),                 # folded conv+BN
                pl.BlockSpec((TW, PW), lambda i: (0, 0)),                  # pooling matrix
                pl.BlockSpec((NB_CLASSES, FP, PW), lambda i: (0, 0, 0)),   # FC weight
            ],
            out_specs=pl.BlockSpec((bb, OUT_W), lambda i: (i, 0)),
            scratch_shapes=[pltpu.VMEM((bb * FP, TW), jnp.bfloat16)],
        ),
        compiler_params=pltpu.CompilerParams(
            dimension_semantics=("parallel",),
            vmem_limit_bytes=32 * 1024 * 1024),
    )(cols, params["wc"], params["pool"], params["fcw"])
    return out[:B, :NB_CLASSES]


def prepare_params(raw):
    """Fold torch-layout weights/BN stats into the kernel's lane-dense layouts."""
    w1, w2 = raw["w1"], raw["w2"]                    # (F, KERN), (F_out, F_in, CHANS)
    scale = raw["gamma"] / jnp.sqrt(raw["var"] + BN_EPS)          # (F,)
    shift = raw["beta"] - raw["mean"] * scale                     # (F,)

    # Wc[g, k*CHANS + c] = scale[g] * sum_f w2[g,f,c] * w1[f,k]; column KC = shift.
    comb = jnp.einsum('gfc,fk->gkc', w2, w1).reshape(F, KC) * scale[:, None]
    wc = jnp.zeros((FP, KC2), jnp.float32)
    wc = wc.at[:F, :KC].set(comb)
    wc = wc.at[:F, KC].set(shift)
    wc = wc.astype(jnp.bfloat16)

    # AvgPool2d((1,35), stride (1,7)) as a (TW, PW) averaging matrix (zero-padded).
    t_idx = jnp.arange(TW)[:, None]
    j_idx = jnp.arange(PW)[None, :]
    pool = jnp.where((j_idx < P) & (t_idx >= POOL_S * j_idx) &
                     (t_idx < POOL_S * j_idx + POOL_K),
                     jnp.float32(1.0 / POOL_K),
                     jnp.float32(0.0)).astype(jnp.bfloat16)

    # FC weight (N, 980), torch flatten order (f, p) -> (N, FP, PW), zero-padded.
    fcw = jnp.zeros((NB_CLASSES, FP, PW), jnp.float32).at[:, :F, :P].set(
        raw["fc"].reshape(NB_CLASSES, F, P))

    return {"wc": wc, "pool": pool, "fcw": fcw}


def init_raw_params(key):
    """Torch-layout parameters (weight_norm at init is an identity reparam)."""
    ks = jax.random.split(key, 7)
    w1 = 0.1 * jax.random.normal(ks[0], (F, KERN), jnp.float32)           # Conv2d(1,20,(1,13))
    w2 = 0.1 * jax.random.normal(ks[1], (F, F, CHANS), jnp.float32)       # Conv2d(20,20,(Chans,1)) [g,f,c]
    gamma = 1.0 + 0.1 * jax.random.normal(ks[2], (F,), jnp.float32)
    beta = 0.1 * jax.random.normal(ks[3], (F,), jnp.float32)
    mean = 0.1 * jax.random.normal(ks[4], (F,), jnp.float32)
    var = jax.random.uniform(ks[5], (F,), jnp.float32, 0.8, 1.2)
    fc = 0.1 * jax.random.normal(ks[6], (NB_CLASSES, F * P), jnp.float32)  # Linear(980, ncls)
    return {"w1": w1, "w2": w2, "gamma": gamma, "beta": beta,
            "mean": mean, "var": var, "fc": fc}


def reference_forward(x, raw):
    """Pure-JAX f32 reference of the PyTorch ShallowConvNet eval forward."""
    xpad = jnp.pad(x, ((0, 0), (0, 0), (PAD, PAD)))
    shifts = jnp.stack([xpad[:, :, k:k + T] for k in range(KERN)], axis=0)  # (K,B,C,T)
    y1 = jnp.einsum('fk,kbct->bfct', raw["w1"], shifts)
    y2 = jnp.einsum('gfc,bfct->bgt', raw["w2"], y1)
    scale = raw["gamma"] / jnp.sqrt(raw["var"] + BN_EPS)
    y2 = y2 * scale[None, :, None] + (raw["beta"] - raw["mean"] * scale)[None, :, None]
    y2 = y2 * y2
    pooled = jnp.stack([jnp.mean(y2[:, :, POOL_S * j:POOL_S * j + POOL_K], axis=-1)
                        for j in range(P)], axis=-1)                        # (B,F,P)
    logits = jnp.einsum('bfp,nfp->bn', jnp.log1p(pooled),
                        raw["fc"].reshape(NB_CLASSES, F, P))
    return jax.nn.softmax(logits, axis=-1)


# TODO(synk): modelType branches that wrap external braindecode models
# (EEGNetV1, EEGNetV4, waveletEEGNetV4, wavDeepCONV/Deep4Net) are not
# reproducible from the given source and are not implemented here.

if __name__ == "__main__":
    key = jax.random.PRNGKey(0)
    kp, kx = jax.random.split(key)
    raw = init_raw_params(kp)
    params = prepare_params(raw)
    x = jax.random.normal(kx, (2, CHANS, T), jnp.float32)     # (B, Chans, n_times)

    out = jax.block_until_ready(shallowconvnet_forward(x, params))

    assert out.shape == (2, NB_CLASSES), out.shape
    assert bool(jnp.all(jnp.isfinite(out)))
    assert bool(jnp.allclose(jnp.sum(out, axis=1), 1.0, atol=1e-4))

    ref = reference_forward(x, raw)
    # bf16 MXU operands -> compare against the f32 reference at bf16-level tolerance
    assert bool(jnp.allclose(out, ref, atol=2e-2, rtol=2e-2)), (out, ref)
    print("KERNEL_OK")
</pallas_src>

<mosaic_0001>
module attributes {stable_mosaic.version = 11 : i64} {
  func.func @kernel(%arg0: i32, %arg1: memref<8x112x384xbf16, #tpu.memory_space<vmem>>, %arg2: memref<32x112xbf16, #tpu.memory_space<vmem>>, %arg3: memref<384x128xbf16, #tpu.memory_space<vmem>>, %arg4: memref<2x32x128xf32, #tpu.memory_space<vmem>>, %arg5: memref<8x128xf32, #tpu.memory_space<vmem>>, %arg6: memref<256x384xbf16, #tpu.memory_space<vmem>>) attributes {dimension_semantics = [#tpu.dimension_semantics<parallel>], iteration_bounds = array<i64: 1>, scalar_prefetch = 0 : i64, scratch_operands = 1 : i64, tpu.core_type = #tpu.core_type<tc>, window_params = [{transform_indices = @transform_0, window_bounds = array<i64: 8, 112, 384>}, {pipeline_mode = #tpu.pipeline_mode<synchronous>, transform_indices = @transform_1, window_bounds = array<i64: 32, 112>}, {pipeline_mode = #tpu.pipeline_mode<synchronous>, transform_indices = @transform_2, window_bounds = array<i64: 384, 128>}, {pipeline_mode = #tpu.pipeline_mode<synchronous>, transform_indices = @transform_3, window_bounds = array<i64: 2, 32, 128>}, {transform_indices = @transform_4, window_bounds = array<i64: 8, 128>}]} {
    %c0 = arith.constant 0 : index
    %c0_0 = arith.constant 0 : index
    %0 = vector.load %arg2[%c0, %c0_0] : memref<32x112xbf16, #tpu.memory_space<vmem>>, vector<32x112xbf16>
    %c0_1 = arith.constant 0 : index
    %c0_2 = arith.constant 0 : index
    %c0_3 = arith.constant 0 : index
    %1 = vector.load %arg1[%c0_1, %c0_2, %c0_3] : memref<8x112x384xbf16, #tpu.memory_space<vmem>>, vector<1x112x384xbf16>
    %2 = vector.shape_cast %1 : vector<1x112x384xbf16> to vector<112x384xbf16>
    %cst = arith.constant dense<0.000000e+00> : vector<32x384xf32>
    %3 = tpu.matmul %0, %2, %cst {dimension_numbers = #tpu.dot_dimension_numbers<[1], [0], [0], [1], [0, 0, 1, 1], [], []>} : vector<32x112xbf16>, vector<112x384xbf16>, vector<32x384xf32> -> vector<32x384xf32>
    %4 = arith.mulf %3, %3 : vector<32x384xf32>
    %5 = arith.truncf %4 : vector<32x384xf32> to vector<32x384xbf16>
    %c0_4 = arith.constant 0 : index
    %c0_5 = arith.constant 0 : index
    %6 = vector.load %arg6[%c0_4, %c0_5] : memref<256x384xbf16, #tpu.memory_space<vmem>>, vector<32x384xbf16>
    tpu.vector_store %arg6[%c0_4, %c0_5], %5 {strides = array<i32>} : memref<256x384xbf16, #tpu.memory_space<vmem>>, vector<32x384xbf16>,
    %c1 = arith.constant 1 : index
    %c0_6 = arith.constant 0 : index
    %c0_7 = arith.constant 0 : index
    %7 = vector.load %arg1[%c1, %c0_6, %c0_7] : memref<8x112x384xbf16, #tpu.memory_space<vmem>>, vector<1x112x384xbf16>
    %8 = vector.shape_cast %7 : vector<1x112x384xbf16> to vector<112x384xbf16>
    %cst_8 = arith.constant dense<0.000000e+00> : vector<32x384xf32>
    %9 = tpu.matmul %0, %8, %cst_8 {dimension_numbers = #tpu.dot_dimension_numbers<[1], [0], [0], [1], [0, 0, 1, 1], [], []>} : vector<32x112xbf16>, vector<112x384xbf16>, vector<32x384xf32> -> vector<32x384xf32>
    %10 = arith.mulf %9, %9 : vector<32x384xf32>
    %11 = arith.truncf %10 : vector<32x384xf32> to vector<32x384xbf16>
    %c32 = arith.constant 32 : index
    %c0_9 = arith.constant 0 : index
    %12 = vector.load %arg6[%c32, %c0_9] : memref<256x384xbf16, #tpu.memory_space<vmem>>, vector<32x384xbf16>
    tpu.vector_store %arg6[%c32, %c0_9], %11 {strides = array<i32>} : memref<256x384xbf16, #tpu.memory_space<vmem>>, vector<32x384xbf16>,
    %c2 = arith.constant 2 : index
    %c0_10 = arith.constant 0 : index
    %c0_11 = arith.constant 0 : index
    %13 = vector.load %arg1[%c2, %c0_10, %c0_11] : memref<8x112x384xbf16, #tpu.memory_space<vmem>>, vector<1x112x384xbf16>
    %14 = vector.shape_cast %13 : vector<1x112x384xbf16> to vector<112x384xbf16>
    %cst_12 = arith.constant dense<0.000000e+00> : vector<32x384xf32>
    %15 = tpu.matmul %0, %14, %cst_12 {dimension_numbers = #tpu.dot_dimension_numbers<[1], [0], [0], [1], [0, 0, 1, 1], [], []>} : vector<32x112xbf16>, vector<112x384xbf16>, vector<32x384xf32> -> vector<32x384xf32>
    %16 = arith.mulf %15, %15 : vector<32x384xf32>
    %17 = arith.truncf %16 : vector<32x384xf32> to vector<32x384xbf16>
    %c64 = arith.constant 64 : index
    %c0_13 = arith.constant 0 : index
    %18 = vector.load %arg6[%c64, %c0_13] : memref<256x384xbf16, #tpu.memory_space<vmem>>, vector<32x384xbf16>
    tpu.vector_store %arg6[%c64, %c0_13], %17 {strides = array<i32>} : memref<256x384xbf16, #tpu.memory_space<vmem>>, vector<32x384xbf16>,
    %c3 = arith.constant 3 : index
    %c0_14 = arith.constant 0 : index
    %c0_15 = arith.constant 0 : index
    %19 = vector.load %arg1[%c3, %c0_14, %c0_15] : memref<8x112x384xbf16, #tpu.memory_space<vmem>>, vector<1x112x384xbf16>
    %20 = vector.shape_cast %19 : vector<1x112x384xbf16> to vector<112x384xbf16>
    %cst_16 = arith.constant dense<0.000000e+00> : vector<32x384xf32>
    %21 = tpu.matmul %0, %20, %cst_16 {dimension_numbers = #tpu.dot_dimension_numbers<[1], [0], [0], [1], [0, 0, 1, 1], [], []>} : vector<32x112xbf16>, vector<112x384xbf16>, vector<32x384xf32> -> vector<32x384xf32>
    %22 = arith.mulf %21, %21 : vector<32x384xf32>
    %23 = arith.truncf %22 : vector<32x384xf32> to vector<32x384xbf16>
    %c96 = arith.constant 96 : index
    %c0_17 = arith.constant 0 : index
    %24 = vector.load %arg6[%c96, %c0_17] : memref<256x384xbf16, #tpu.memory_space<vmem>>, vector<32x384xbf16>
    tpu.vector_store %arg6[%c96, %c0_17], %23 {strides = array<i32>} : memref<256x384xbf16, #tpu.memory_space<vmem>>, vector<32x384xbf16>,
    %c4 = arith.constant 4 : index
    %c0_18 = arith.constant 0 : index
    %c0_19 = arith.constant 0 : index
    %25 = vector.load %arg1[%c4, %c0_18, %c0_19] : memref<8x112x384xbf16, #tpu.memory_space<vmem>>, vector<1x112x384xbf16>
    %26 = vector.shape_cast %25 : vector<1x112x384xbf16> to vector<112x384xbf16>
    %cst_20 = arith.constant dense<0.000000e+00> : vector<32x384xf32>
    %27 = tpu.matmul %0, %26, %cst_20 {dimension_numbers = #tpu.dot_dimension_numbers<[1], [0], [0], [1], [0, 0, 1, 1], [], []>} : vector<32x112xbf16>, vector<112x384xbf16>, vector<32x384xf32> -> vector<32x384xf32>
    %28 = arith.mulf %27, %27 : vector<32x384xf32>
    %29 = arith.truncf %28 : vector<32x384xf32> to vector<32x384xbf16>
    %c128 = arith.constant 128 : index
    %c0_21 = arith.constant 0 : index
    %30 = vector.load %arg6[%c128, %c0_21] : memref<256x384xbf16, #tpu.memory_space<vmem>>, vector<32x384xbf16>
    tpu.vector_store %arg6[%c128, %c0_21], %29 {strides = array<i32>} : memref<256x384xbf16, #tpu.memory_space<vmem>>, vector<32x384xbf16>,
    %c5 = arith.constant 5 : index
    %c0_22 = arith.constant 0 : index
    %c0_23 = arith.constant 0 : index
    %31 = vector.load %arg1[%c5, %c0_22, %c0_23] : memref<8x112x384xbf16, #tpu.memory_space<vmem>>, vector<1x112x384xbf16>
    %32 = vector.shape_cast %31 : vector<1x112x384xbf16> to vector<112x384xbf16>
    %cst_24 = arith.constant dense<0.000000e+00> : vector<32x384xf32>
    %33 = tpu.matmul %0, %32, %cst_24 {dimension_numbers = #tpu.dot_dimension_numbers<[1], [0], [0], [1], [0, 0, 1, 1], [], []>} : vector<32x112xbf16>, vector<112x384xbf16>, vector<32x384xf32> -> vector<32x384xf32>
    %34 = arith.mulf %33, %33 : vector<32x384xf32>
    %35 = arith.truncf %34 : vector<32x384xf32> to vector<32x384xbf16>
    %c160 = arith.constant 160 : index
    %c0_25 = arith.constant 0 : index
    %36 = vector.load %arg6[%c160, %c0_25] : memref<256x384xbf16, #tpu.memory_space<vmem>>, vector<32x384xbf16>
    tpu.vector_store %arg6[%c160, %c0_25], %35 {strides = array<i32>} : memref<256x384xbf16, #tpu.memory_space<vmem>>, vector<32x384xbf16>,
    %c6 = arith.constant 6 : index
    %c0_26 = arith.constant 0 : index
    %c0_27 = arith.constant 0 : index
    %37 = vector.load %arg1[%c6, %c0_26, %c0_27] : memref<8x112x384xbf16, #tpu.memory_space<vmem>>, vector<1x112x384xbf16>
    %38 = vector.shape_cast %37 : vector<1x112x384xbf16> to vector<112x384xbf16>
    %cst_28 = arith.constant dense<0.000000e+00> : vector<32x384xf32>
    %39 = tpu.matmul %0, %38, %cst_28 {dimension_numbers = #tpu.dot_dimension_numbers<[1], [0], [0], [1], [0, 0, 1, 1], [], []>} : vector<32x112xbf16>, vector<112x384xbf16>, vector<32x384xf32> -> vector<32x384xf32>
    %40 = arith.mulf %39, %39 : vector<32x384xf32>
    %41 = arith.truncf %40 : vector<32x384xf32> to vector<32x384xbf16>
    %c192 = arith.constant 192 : index
    %c0_29 = arith.constant 0 : index
    %42 = vector.load %arg6[%c192, %c0_29] : memref<256x384xbf16, #tpu.memory_space<vmem>>, vector<32x384xbf16>
    tpu.vector_store %arg6[%c192, %c0_29], %41 {strides = array<i32>} : memref<256x384xbf16, #tpu.memory_space<vmem>>, vector<32x384xbf16>,
    %c7 = arith.constant 7 : index
    %c0_30 = arith.constant 0 : index
    %c0_31 = arith.constant 0 : index
    %43 = vector.load %arg1[%c7, %c0_30, %c0_31] : memref<8x112x384xbf16, #tpu.memory_space<vmem>>, vector<1x112x384xbf16>
    %44 = vector.shape_cast %43 : vector<1x112x384xbf16> to vector<112x384xbf16>
    %cst_32 = arith.constant dense<0.000000e+00> : vector<32x384xf32>
    %45 = tpu.matmul %0, %44, %cst_32 {dimension_numbers = #tpu.dot_dimension_numbers<[1], [0], [0], [1], [0, 0, 1, 1], [], []>} : vector<32x112xbf16>, vector<112x384xbf16>, vector<32x384xf32> -> vector<32x384xf32>
    %46 = arith.mulf %45, %45 : vector<32x384xf32>
    %47 = arith.truncf %46 : vector<32x384xf32> to vector<32x384xbf16>
    %c224 = arith.constant 224 : index
    %c0_33 = arith.constant 0 : index
    %48 = vector.load %arg6[%c224, %c0_33] : memref<256x384xbf16, #tpu.memory_space<vmem>>, vector<32x384xbf16>
    tpu.vector_store %arg6[%c224, %c0_33], %47 {strides = array<i32>} : memref<256x384xbf16, #tpu.memory_space<vmem>>, vector<32x384xbf16>,
    %c0_34 = arith.constant 0 : index
    %c0_35 = arith.constant 0 : index
    %49 = vector.load %arg6[%c0_34, %c0_35] : memref<256x384xbf16, #tpu.memory_space<vmem>>, vector<256x384xbf16>
    %c0_36 = arith.constant 0 : index
    %c0_37 = arith.constant 0 : index
    %50 = vector.load %arg3[%c0_36, %c0_37] : memref<384x128xbf16, #tpu.memory_space<vmem>>, vector<384x128xbf16>
    %cst_38 = arith.constant dense<0.000000e+00> : vector<256x128xf32>
    %51 = tpu.matmul %49, %50, %cst_38 {dimension_numbers = #tpu.dot_dimension_numbers<[1], [0], [0], [1], [0, 0, 1, 1], [], []>} : vector<256x384xbf16>, vector<384x128xbf16>, vector<256x128xf32> -> vector<256x128xf32>
    %52 = math.log1p %51 : vector<256x128xf32>
    %53 = vector.shape_cast %52 : vector<256x128xf32> to vector<8x32x128xf32>
    %c0_39 = arith.constant 0 : index
    %c0_40 = arith.constant 0 : index
    %c0_41 = arith.constant 0 : index
    %54 = vector.load %arg4[%c0_39, %c0_40, %c0_41] : memref<2x32x128xf32, #tpu.memory_space<vmem>>, vector<2x32x128xf32>
    %55 = vector.extract_strided_slice %54 {offsets = [0, 0, 0], sizes = [1, 32, 128], strides = [1, 1, 1]} : vector<2x32x128xf32> to vector<1x32x128xf32>
    %56 = vector.shape_cast %55 : vector<1x32x128xf32> to vector<32x128xf32>
    %57 = vector.shape_cast %56 : vector<32x128xf32> to vector<1x32x128xf32>
    %58 = vector.broadcast %57 : vector<1x32x128xf32> to vector<8x32x128xf32>
    %59 = arith.mulf %53, %58 : vector<8x32x128xf32>
    %cst_42 = arith.constant dense<0.000000e+00> : vector<8x32xf32>
    %60 = vector.multi_reduction <add>, %59, %cst_42 [2] : vector<8x32x128xf32> to vector<8x32xf32>
    %cst_43 = arith.constant dense<0.000000e+00> : vector<8xf32>
    %61 = vector.multi_reduction <add>, %60, %cst_43 [1] : vector<8x32xf32> to vector<8xf32>
    %62 = vector.shape_cast %61 : vector<8xf32> to vector<8x1xf32>
    %63 = vector.extract_strided_slice %54 {offsets = [1, 0, 0], sizes = [1, 32, 128], strides = [1, 1, 1]} : vector<2x32x128xf32> to vector<1x32x128xf32>
    %64 = vector.shape_cast %63 : vector<1x32x128xf32> to vector<32x128xf32>
    %65 = vector.shape_cast %64 : vector<32x128xf32> to vector<1x32x128xf32>
    %66 = vector.broadcast %65 : vector<1x32x128xf32> to vector<8x32x128xf32>
    %67 = arith.mulf %53, %66 : vector<8x32x128xf32>
    %cst_44 = arith.constant dense<0.000000e+00> : vector<8x32xf32>
    %68 = vector.multi_reduction <add>, %67, %cst_44 [2] : vector<8x32x128xf32> to vector<8x32xf32>
    %cst_45 = arith.constant dense<0.000000e+00> : vector<8xf32>
    %69 = vector.multi_reduction <add>, %68, %cst_45 [1] : vector<8x32xf32> to vector<8xf32>
    %70 = vector.shape_cast %69 : vector<8xf32> to vector<8x1xf32>
    %71 = tpu.concatenate %62, %70 in 1 : vector<8x1xf32>, vector<8x1xf32> -> vector<8x2xf32>
    %cst_46 = arith.constant dense<0xFF800000> : vector<8xf32>
    %72 = vector.multi_reduction <maximumf>, %71, %cst_46 [1] : vector<8x2xf32> to vector<8xf32>
    %73 = vector.shape_cast %72 : vector<8xf32> to vector<8x1xf32>
    %74 = vector.broadcast %73 : vector<8x1xf32> to vector<8x2xf32>
    %75 = arith.subf %71, %74 : vector<8x2xf32>
    %76 = math.exp %75 : vector<8x2xf32>
    %cst_47 = arith.constant dense<0.000000e+00> : vector<8xf32>
    %77 = vector.multi_reduction <add>, %76, %cst_47 [1] : vector<8x2xf32> to vector<8xf32>
    %78 = vector.shape_cast %77 : vector<8xf32> to vector<8x1xf32>
    %79 = vector.broadcast %78 : vector<8x1xf32> to vector<8x2xf32>
    %80 = arith.divf %76, %79 : vector<8x2xf32>
    %cst_48 = arith.constant 0.000000e+00 : f32
    %81 = vector.broadcast %cst_48 : f32 to vector<8x126xf32>
    %82 = tpu.concatenate %80, %81 in 1 : vector<8x2xf32>, vector<8x126xf32> -> vector<8x128xf32>
    %c0_49 = arith.constant 0 : index
    %c0_50 = arith.constant 0 : index
    %83 = vector.load %arg5[%c0_49, %c0_50] : memref<8x128xf32, #tpu.memory_space<vmem>>, vector<8x128xf32>
    tpu.vector_store %arg5[%c0_49, %c0_50], %82 {strides = array<i32>} : memref<8x128xf32, #tpu.memory_space<vmem>>, vector<8x128xf32>,
    return
  }
  func.func @transform_0(%arg0: i32) -> (i32, i32, i32) {
    %c0_i32 = arith.constant 0 : i32
    %c0_i32_0 = arith.constant 0 : i32
    %c0_i32_1 = arith.constant 0 : i32
    return %arg0, %c0_i32, %c0_i32_0 : i32, i32, i32
  }
  func.func @transform_1(%arg0: i32) -> (i32, i32) {
    %c0_i32 = arith.constant 0 : i32
    %c0_i32_0 = arith.constant 0 : i32
    %c0_i32_1 = arith.constant 0 : i32
    return %c0_i32, %c0_i32_0 : i32, i32
  }
  func.func @transform_2(%arg0: i32) -> (i32, i32) {
    %c0_i32 = arith.constant 0 : i32
    %c0_i32_0 = arith.constant 0 : i32
    %c0_i32_1 = arith.constant 0 : i32
    return %c0_i32, %c0_i32_0 : i32, i32
  }
  func.func @transform_3(%arg0: i32) -> (i32, i32, i32) {
    %c0_i32 = arith.constant 0 : i32
    %c0_i32_0 = arith.constant 0 : i32
    %c0_i32_1 = arith.constant 0 : i32
    %c0_i32_2 = arith.constant 0 : i32
    return %c0_i32, %c0_i32_0, %c0_i32_1 : i32, i32, i32
  }
  func.func @transform_4(%arg0: i32) -> (i32, i32) {
    %c0_i32 = arith.constant 0 : i32
    %c0_i32_0 = arith.constant 0 : i32
    return %arg0, %c0_i32 : i32, i32
  }
}

</mosaic_0001>

<bundles_post_ra>
// kernel: shallowconvnet_forward.1
= control target key start
LH: loop header
LB: loop body
LE: loop exit
PB: predicated region body
PF: predicated region fallthrough
CT: control target
= control target key end

     0   :  { %v5593_v1 = vmov 0   ;;  %vm172_vm0 = vcmask 916480   ;;  %s6952_s0 = inlined_call_operand.vmem [shape: bf16[8,112,384], index: 0, kind: input, shape index: {}]   ;;  %s6953_s1 = inlined_call_operand.vmem [shape: bf16[32,112], index: 1, kind: input, shape index: {}]   ;;  %s6954_s2 = inlined_call_operand.vmem [shape: bf16[384,128], index: 2, kind: input, shape index: {}]   ;;  %s6955_s3 = inlined_call_operand.vmem [shape: f32[2,32,128], index: 3, kind: input, shape index: {}]   ;;  %s6956_s4 = inlined_call_operand.vmem [shape: f32[8,128], index: 4, kind: output, shape index: {}]  }
   0x1   :  { %v5225_v0 = vld [vmem:[%s6952_s0 + $0x94] ss:$12 sps:$4 sm:$0xff]   ;;  %211 = vmatprep.mubr.bf16.mxu0 %v5593_v1  ;;  %v5227_v2 = vld [vmem:[%s6952_s0 + $0x90] ss:$12 sps:$4 sm:$0xff]   ;;  %v5230_v4 = vld [vmem:[%s6952_s0 + $0x78] ss:$12 sps:$4 sm:$0xff]  }
   0x2   :  { %181 = vmatprep.subr.bf16.mxu0 %v5225_v0  ;;  %v5228_v3 = vld [vmem:[%s6952_s0 + $0x7c] ss:$12 sps:$4 sm:$0xff]   ;;  %v5231_v5 = vld [vmem:[%s6952_s0 + $0x64] ss:$12 sps:$4 sm:$0xff]   ;;  %v5233_v6 = vld [vmem:[%s6952_s0 + $0x60] ss:$12 sps:$4 sm:$0xff]  }
   0x3   :  { %182 = vmatpush1.bf16.msra.mxu0 %v5227_v2  ;;  %v5234_v7 = vld [vmem:[%s6952_s0 + $0x4c] ss:$12 sps:$4 sm:$0xff]   ;;  %v5644_v8 = vld [vmem:[%s6953_s1] sm:$0xff]   ;;  %v5236_v9 = vld [vmem:[%s6952_s0 + $0x48] ss:$12 sps:$4 sm:$0xff]  }
   0x4   :  { %183 = vmatprep.subr.bf16.mxu0 %v5228_v3  ;;  %v5237_v10 = vld [vmem:[%s6952_s0 + $0x34] ss:$12 sps:$4 sm:$0xff]   ;;  %5030 = vmatprep.mubr.msk.bf16.mxu1 %vm172_vm0, %v5644_v8  ;;  %v5239_v11 = vld [vmem:[%s6952_s0 + $0x30] ss:$12 sps:$4 sm:$0xff]   ;;  %v5242_v13 = vld [vmem:[%s6952_s0 + $0x18] ss:$12 sps:$4 sm:$0xff]  }
   0x5   :  { %v5240_v12 = vld [vmem:[%s6952_s0 + $0x1c] ss:$12 sps:$4 sm:$0xff]   ;;  %v5243_v14 = vld [vmem:[%s6952_s0 + $0x4] ss:$12 sps:$4 sm:$0xff]   ;;  %v5245_v15 = vld [vmem:[%s6952_s0] ss:$12 sps:$4 sm:$0xff]  }
   0x6   :  { %v5249_v16 = vld [vmem:[%s6952_s0 + $0x13c] ss:$12 sps:$4 sm:$0xff]   ;;  %v5281_v17 = vld [vmem:[%s6952_s0 + $0x98] ss:$12 sps:$4 sm:$0xff]   ;;  %v5285_v20 = vld [vmem:[%s6952_s0 + $0x80] ss:$12 sps:$4 sm:$0xff]  }
   0x7   :  { %184 = vmatpush1.bf16.msra.mxu0 %v5230_v4  ;;  %v5247_v18 = vld [vmem:[%s6952_s0 + $0x138] ss:$12 sps:$4 sm:$0xff]   ;;  %5016 = vmatprep.subr.bf16.mxu1 %v5281_v17  ;;  %v5250_v21 = vld [vmem:[%s6952_s0 + $0x120] ss:$12 sps:$4 sm:$0xff]   ;;  %v5289_v22 = vld [vmem:[%s6952_s0 + $0x68] ss:$12 sps:$4 sm:$0xff]  }
   0x8   :  { %185 = vmatprep.subr.bf16.mxu0 %v5231_v5  ;;  %v5252_v19 = vld [vmem:[%s6952_s0 + $0x124] ss:$12 sps:$4 sm:$0xff]   ;;  %5017 = vmatpush3.bf16.msra.mxu1 %v5281_v17  ;;  %v5255_v23 = vld [vmem:[%s6952_s0 + $0x10c] ss:$12 sps:$4 sm:$0xff]   ;;  %v5253_v26 = vld [vmem:[%s6952_s0 + $0x108] ss:$12 sps:$4 sm:$0xff]  }
   0x9   :  { %5018 = vmatprep.subr.bf16.mxu1 %v5285_v20  ;;  %v5699_v24 = vld [vmem:[%s6953_s1 + $0x8] sm:$0xff]   ;;  %v5293_v25 = vld [vmem:[%s6952_s0 + $0x50] ss:$12 sps:$4 sm:$0xff]   ;;  %v5258_v27 = vld [vmem:[%s6952_s0 + $0xf4] ss:$12 sps:$4 sm:$0xff]  }
   0xa   :  { %v5297_v28 = vld [vmem:[%s6952_s0 + $0x38] ss:$12 sps:$4 sm:$0xff]   ;;  %v5256_v29 = vld [vmem:[%s6952_s0 + $0xf0] ss:$12 sps:$4 sm:$0xff]   ;;  %v5301_v31 = vld [vmem:[%s6952_s0 + $0x20] ss:$12 sps:$4 sm:$0xff]  }
   0xb   :  { %186 = vmatpush1.bf16.msra.mxu0 %v5233_v6  ;;  %v5262_v30 = vld [vmem:[%s6952_s0 + $0xdc] ss:$12 sps:$4 sm:$0xff]   ;;  %v5260_v32 = vld [vmem:[%s6952_s0 + $0xd8] ss:$12 sps:$4 sm:$0xff]   ;;  %v5263_v35 = vld [vmem:[%s6952_s0 + $0xc0] ss:$12 sps:$4 sm:$0xff]  }
   0xc   :  { %187 = vmatprep.subr.bf16.mxu0 %v5234_v7  ;;  %5019 = vmatpush3.bf16.msra.mxu1 %v5285_v20  ;;  %v5265_v33 = vld [vmem:[%s6952_s0 + $0xc4] ss:$12 sps:$4 sm:$0xff]   ;;  %v5305_v34 = vld [vmem:[%s6952_s0 + $0x8] ss:$12 sps:$4 sm:$0xff]   ;;  %v5268_v36 = vld [vmem:[%s6952_s0 + $0xac] ss:$12 sps:$4 sm:$0xff]  }
   0xd   :  { %5020 = vmatprep.subr.bf16.mxu1 %v5289_v22  ;;  %v5309_v37 = vld [vmem:[%s6952_s0 + $0x140] ss:$12 sps:$4 sm:$0xff]   ;;  %v5266_v38 = vld [vmem:[%s6952_s0 + $0xa8] ss:$12 sps:$4 sm:$0xff]   ;;  %v5271_v39 = vld [vmem:[%s6952_s0 + $0x1e4] ss:$12 sps:$4 sm:$0xff]  }
   0xe   :  { %v5313_v40 = vld [vmem:[%s6952_s0 + $0x128] ss:$12 sps:$4 sm:$0xff]   ;;  %v5269_v41 = vld [vmem:[%s6952_s0 + $0x1e0] ss:$12 sps:$4 sm:$0xff]   ;;  %v5317_v43 = vld [vmem:[%s6952_s0 + $0x110] ss:$12 sps:$4 sm:$0xff]  }
   0xf   :  { %188 = vmatpush1.bf16.msra.mxu0 %v5236_v9  ;;  %v5274_v42 = vld [vmem:[%s6952_s0 + $0x1cc] ss:$12 sps:$4 sm:$0xff]   ;;  %v5272_v44 = vld [vmem:[%s6952_s0 + $0x1c8] ss:$12 sps:$4 sm:$0xff]   ;;  %v5275_v47 = vld [vmem:[%s6952_s0 + $0x1b0] ss:$12 sps:$4 sm:$0xff]  }
  0x10   :  { %189 = vmatprep.subr.bf16.mxu0 %v5237_v10  ;;  %5021 = vmatpush3.bf16.msra.mxu1 %v5289_v22  ;;  %v5277_v45 = vld [vmem:[%s6952_s0 + $0x1b4] ss:$12 sps:$4 sm:$0xff]   ;;  %v5321_v46 = vld [vmem:[%s6952_s0 + $0xf8] ss:$12 sps:$4 sm:$0xff]   ;;  %v5280_v48 = vld [vmem:[%s6952_s0 + $0x19c] ss:$12 sps:$4 sm:$0xff]  }
  0x11   :  { %5022 = vmatprep.subr.bf16.mxu1 %v5293_v25  ;;  %v5325_v49 = vld [vmem:[%s6952_s0 + $0xe0] ss:$12 sps:$4 sm:$0xff]   ;;  %v5278_v50 = vld [vmem:[%s6952_s0 + $0x198] ss:$12 sps:$4 sm:$0xff]   ;;  %v5329_v52 = vld [vmem:[%s6952_s0 + $0xc8] ss:$12 sps:$4 sm:$0xff]  }
  0x12   :  { %v5284_v51 = vld [vmem:[%s6952_s0 + $0x184] ss:$12 sps:$4 sm:$0xff]   ;;  %v5282_v53 = vld [vmem:[%s6952_s0 + $0x180] ss:$12 sps:$4 sm:$0xff]   ;;  %v5286_v56 = vld [vmem:[%s6952_s0 + $0x168] ss:$12 sps:$4 sm:$0xff]  }
  0x13   :  { %190 = vmatpush1.bf16.msra.mxu0 %v5239_v11  ;;  %v5288_v54 = vld [vmem:[%s6952_s0 + $0x16c] ss:$12 sps:$4 sm:$0xff]   ;;  %v5333_v55 = vld [vmem:[%s6952_s0 + $0xb0] ss:$12 sps:$4 sm:$0xff]   ;;  %v5292_v57 = vld [vmem:[%s6952_s0 + $0x154] ss:$12 sps:$4 sm:$0xff]  }
  0x14   :  { %191 = vmatprep.subr.bf16.mxu0 %v5240_v12  ;;  %5023 = vmatpush3.bf16.msra.mxu1 %v5293_v25  ;;  %v5337_v58 = vld [vmem:[%s6952_s0 + $0x1e8] ss:$12 sps:$4 sm:$0xff]   ;;  %v5290_v59 = vld [vmem:[%s6952_s0 + $0x150] ss:$12 sps:$4 sm:$0xff]   ;;  %v5296_v60 = vld [vmem:[%s6952_s0 + $0x28c] ss:$12 sps:$4 sm:$0xff]  }
  0x15   :  { %5024 = vmatprep.subr.bf16.mxu1 %v5297_v28  ;;  %v5341_v61 = vld [vmem:[%s6952_s0 + $0x1d0] ss:$12 sps:$4 sm:$0xff]   ;;  %v5294_v62 = vld [vmem:[%s6952_s0 + $0x288] ss:$12 sps:$4 sm:$0xff]   ;;  %v5345_v0 = vld [vmem:[%s6952_s0 + $0x1b8] ss:$12 sps:$4 sm:$0xff]  }
  0x16   :  { %v5300_v63 = vld [vmem:[%s6952_s0 + $0x274] ss:$12 sps:$4 sm:$0xff]   ;;  %v5298_v2 = vld [vmem:[%s6952_s0 + $0x270] ss:$12 sps:$4 sm:$0xff]   ;;  %v5302_v5 = vld [vmem:[%s6952_s0 + $0x258] ss:$12 sps:$4 sm:$0xff]  }
  0x17   :  { %192 = vmatpush1.bf16.msra.mxu0 %v5242_v13  ;;  %v5304_v3 = vld [vmem:[%s6952_s0 + $0x25c] ss:$12 sps:$4 sm:$0xff]   ;;  %v5349_v4 = vld [vmem:[%s6952_s0 + $0x1a0] ss:$12 sps:$4 sm:$0xff]   ;;  %v5308_v6 = vld [vmem:[%s6952_s0 + $0x244] ss:$12 sps:$4 sm:$0xff]  }
  0x18   :  { %193 = vmatprep.subr.bf16.mxu0 %v5243_v14  ;;  %5025 = vmatpush3.bf16.msra.mxu1 %v5297_v28  ;;  %v5353_v7 = vld [vmem:[%s6952_s0 + $0x188] ss:$12 sps:$4 sm:$0xff]   ;;  %v5306_v9 = vld [vmem:[%s6952_s0 + $0x240] ss:$12 sps:$4 sm:$0xff]   ;;  %v5357_v11 = vld [vmem:[%s6952_s0 + $0x170] ss:$12 sps:$4 sm:$0xff]  }
  0x19   :  { %5026 = vmatprep.subr.bf16.mxu1 %v5301_v31  ;;  %v5312_v10 = vld [vmem:[%s6952_s0 + $0x22c] ss:$12 sps:$4 sm:$0xff]   ;;  %v5310_v12 = vld [vmem:[%s6952_s0 + $0x228] ss:$12 sps:$4 sm:$0xff]   ;;  %v5365_v17 = vld [vmem:[%s6952_s0 + $0x290] ss:$12 sps:$4 sm:$0xff]  }
  0x1a   :  { %v5316_v13 = vld [vmem:[%s6952_s0 + $0x214] ss:$12 sps:$4 sm:$0xff]   ;;  %v5361_v14 = vld [vmem:[%s6952_s0 + $0x158] ss:$12 sps:$4 sm:$0xff]   ;;  %v5328_v22 = vld [vmem:[%s6952_s0 + $0x31c] ss:$12 sps:$4 sm:$0xff]  }
  0x1b   :  { %194 = vmatpush1.bf16.msra.mxu0 %v5245_v15  ;;  %v5314_v15 = vld [vmem:[%s6952_s0 + $0x210] ss:$12 sps:$4 sm:$0xff]   ;;  %v5369_v20 = vld [vmem:[%s6952_s0 + $0x278] ss:$12 sps:$4 sm:$0xff]   ;;  %v5330_v28 = vld [vmem:[%s6952_s0 + $0x300] ss:$12 sps:$4 sm:$0xff]  }
  0x1c   :  { %484 = vmatprep.subr.bf16.mxu0 %v5249_v16  ;;  %5027 = vmatpush3.bf16.msra.mxu1 %v5301_v31  ;;  %v5320_v16 = vld [vmem:[%s6952_s0 + $0x1fc] ss:$12 sps:$4 sm:$0xff]   ;;  %v5326_v25 = vld [vmem:[%s6952_s0 + $0x318] ss:$12 sps:$4 sm:$0xff]  }
  0x1d   :  { %5028 = vmatprep.subr.bf16.mxu1 %v5305_v34  ;;  %v5334_v31 = vld [vmem:[%s6952_s0 + $0x2e8] ss:$12 sps:$4 sm:$0xff]  }
  0x1e   :  { %4233 = vmatmul.mubr.msk.bf16.vlgmr.msra.gmra.mxu0 %vm172_vm0, %v5644_v8 }
  0x1f   :  { %485 = vmatpush1.bf16.msra.mxu0 %v5247_v18  ;;  %221 = vmatprep.mubr.bf16.mxu0 %v5593_v1  ;;  %v5318_v18 = vld [vmem:[%s6952_s0 + $0x1f8] ss:$12 sps:$4 sm:$0xff]  }
  0x20   :  { %486 = vmatprep.subr.bf16.mxu0 %v5252_v19  ;;  %5029 = vmatpush3.bf16.msra.mxu1 %v5305_v34  ;;  %v5324_v19 = vld [vmem:[%s6952_s0 + $0x334] ss:$12 sps:$4 sm:$0xff]   ;;  %v5338_v34 = vld [vmem:[%s6952_s0 + $0x2d0] ss:$12 sps:$4 sm:$0xff]  }
  0x21   :  { %5034 = vmatprep.subr.bf16.mxu1 %v5309_v37 }
  0x23   :  { %487 = vmatpush1.bf16.msra.mxu0 %v5250_v21  ;;  %5031 = vmatmul.mubr.msk.bf16.vlgmr.msra.gmra.mxu1 %vm172_vm0, %v5699_v24  ;;  %v5322_v21 = vld [vmem:[%s6952_s0 + $0x330] ss:$12 sps:$4 sm:$0xff]  }
  0x24   :  { %488 = vmatprep.subr.bf16.mxu0 %v5255_v23  ;;  %5035 = vmatpush3.bf16.msra.mxu1 %v5309_v37  ;;  %v5373_v23 = vld [vmem:[%s6952_s0 + $0x260] ss:$12 sps:$4 sm:$0xff]   ;;  %v5342_v37 = vld [vmem:[%s6952_s0 + $0x2b8] ss:$12 sps:$4 sm:$0xff]  }
  0x25   :  { %5048 = vmatprep.mubr.msk.bf16.mxu1 %vm172_vm0, %v5644_v8  ;;  %5036 = vmatprep.subr.bf16.mxu1 %v5313_v40 }
  0x26   :  { %4234 = vmatmul.mubr.msk.bf16.gmra.mxu0 %vm172_vm0, %v5699_v24 }
  0x27   :  { %489 = vmatpush1.bf16.msra.mxu0 %v5253_v26  ;;  %514 = vmatprep.mubr.bf16.mxu0 %v5593_v1  ;;  %v5332_v26 = vld [vmem:[%s6952_s0 + $0x304] ss:$12 sps:$4 sm:$0xff]  }
  0x28   :  { %490 = vmatprep.subr.bf16.mxu0 %v5258_v27  ;;  %5037 = vmatpush3.bf16.msra.mxu1 %v5313_v40  ;;  %v5377_v27 = vld [vmem:[%s6952_s0 + $0x248] ss:$12 sps:$4 sm:$0xff]   ;;  %v5346_v40 = vld [vmem:[%s6952_s0 + $0x2a0] ss:$12 sps:$4 sm:$0xff]  }
  0x29   :  { %5038 = vmatprep.subr.bf16.mxu1 %v5317_v43 }
  0x2b   :  { %491 = vmatpush1.bf16.msra.mxu0 %v5256_v29  ;;  %v5336_v29 = vld [vmem:[%s6952_s0 + $0x2ec] ss:$12 sps:$4 sm:$0xff]  }
  0x2c   :  { %492 = vmatprep.subr.bf16.mxu0 %v5262_v30  ;;  %5039 = vmatpush3.bf16.msra.mxu1 %v5317_v43  ;;  %v5381_v30 = vld [vmem:[%s6952_s0 + $0x230] ss:$12 sps:$4 sm:$0xff]   ;;  %v5350_v43 = vld [vmem:[%s6952_s0 + $0x3d8] ss:$12 sps:$4 sm:$0xff]  }
  0x2d   :  { %5040 = vmatprep.subr.bf16.mxu1 %v5321_v46 }
  0x2f   :  { %493 = vmatpush1.bf16.msra.mxu0 %v5260_v32  ;;  %v5340_v32 = vld [vmem:[%s6952_s0 + $0x2d4] ss:$12 sps:$4 sm:$0xff]  }
  0x30   :  { %494 = vmatprep.subr.bf16.mxu0 %v5265_v33  ;;  %5041 = vmatpush3.bf16.msra.mxu1 %v5321_v46  ;;  %v5385_v33 = vld [vmem:[%s6952_s0 + $0x218] ss:$12 sps:$4 sm:$0xff]   ;;  %v5354_v46 = vld [vmem:[%s6952_s0 + $0x3c0] ss:$12 sps:$4 sm:$0xff]  }
  0x31   :  { %5042 = vmatprep.subr.bf16.mxu1 %v5325_v49 }
  0x33   :  { %495 = vmatpush1.bf16.msra.mxu0 %v5263_v35  ;;  %v5344_v35 = vld [vmem:[%s6952_s0 + $0x2bc] ss:$12 sps:$4 sm:$0xff]  }
  0x34   :  { %496 = vmatprep.subr.bf16.mxu0 %v5268_v36  ;;  %5043 = vmatpush3.bf16.msra.mxu1 %v5325_v49  ;;  %v5389_v36 = vld [vmem:[%s6952_s0 + $0x200] ss:$12 sps:$4 sm:$0xff]  }
  0x35   :  { %5044 = vmatprep.subr.bf16.mxu1 %v5329_v52  ;;  %v5364_v49 = vld [vmem:[%s6952_s0 + $0x394] ss:$12 sps:$4 sm:$0xff]  }
  0x37   :  { %497 = vmatpush1.bf16.msra.mxu0 %v5266_v38  ;;  %v5348_v38 = vld [vmem:[%s6952_s0 + $0x2a4] ss:$12 sps:$4 sm:$0xff]  }
  0x38   :  { %787 = vmatprep.subr.bf16.mxu0 %v5271_v39  ;;  %5045 = vmatpush3.bf16.msra.mxu1 %v5329_v52  ;;  %v5393_v39 = vld [vmem:[%s6952_s0 + $0x338] ss:$12 sps:$4 sm:$0xff]   ;;  %v5368_v52 = vld [vmem:[%s6952_s0 + $0x37c] ss:$12 sps:$4 sm:$0xff]  }
  0x39   :  { %5046 = vmatprep.subr.bf16.mxu1 %v5333_v55 }
  0x3a   :  { %4294 = vmatmul.mubr.msk.bf16.vlgmr.msra.gmra.mxu0 %vm172_vm0, %v5644_v8 }
  0x3b   :  { %788 = vmatpush1.bf16.msra.mxu0 %v5269_v41  ;;  %524 = vmatprep.mubr.bf16.mxu0 %v5593_v1  ;;  %v5352_v41 = vld [vmem:[%s6952_s0 + $0x3dc] ss:$12 sps:$4 sm:$0xff]  }
  0x3c   :  { %789 = vmatprep.subr.bf16.mxu0 %v5274_v42  ;;  %5047 = vmatpush3.bf16.msra.mxu1 %v5333_v55  ;;  %v5397_v42 = vld [vmem:[%s6952_s0 + $0x320] ss:$12 sps:$4 sm:$0xff]   ;;  %v5372_v55 = vld [vmem:[%s6952_s0 + $0x364] ss:$12 sps:$4 sm:$0xff]  }
  0x3d   :  { %5052 = vmatprep.subr.bf16.mxu1 %v5337_v58 }
  0x3f   :  { %790 = vmatpush1.bf16.msra.mxu0 %v5272_v44  ;;  %5049 = vmatmul.mubr.msk.bf16.vlgmr.msra.gmra.mxu1 %vm172_vm0, %v5699_v24  ;;  %v5356_v44 = vld [vmem:[%s6952_s0 + $0x3c4] ss:$12 sps:$4 sm:$0xff]  }
  0x40   :  { %791 = vmatprep.subr.bf16.mxu0 %v5277_v45  ;;  %5053 = vmatpush3.bf16.msra.mxu1 %v5337_v58  ;;  %v5401_v45 = vld [vmem:[%s6952_s0 + $0x308] ss:$12 sps:$4 sm:$0xff]   ;;  %v5376_v58 = vld [vmem:[%s6952_s0 + $0x34c] ss:$12 sps:$4 sm:$0xff]  }
  0x41   :  { %5066 = vmatprep.mubr.msk.bf16.mxu1 %vm172_vm0, %v5644_v8  ;;  %5054 = vmatprep.subr.bf16.mxu1 %v5341_v61 }
  0x42   :  { %4295 = vmatmul.mubr.msk.bf16.gmra.mxu0 %vm172_vm0, %v5699_v24 }
  0x43   :  { %792 = vmatpush1.bf16.msra.mxu0 %v5275_v47  ;;  %817 = vmatprep.mubr.bf16.mxu0 %v5593_v1  ;;  %v5360_v47 = vld [vmem:[%s6952_s0 + $0x3ac] ss:$12 sps:$4 sm:$0xff]  }
  0x44   :  { %793 = vmatprep.subr.bf16.mxu0 %v5280_v48  ;;  %5055 = vmatpush3.bf16.msra.mxu1 %v5341_v61  ;;  %v5405_v48 = vld [vmem:[%s6952_s0 + $0x2f0] ss:$12 sps:$4 sm:$0xff]  }
  0x45   :  { %5056 = vmatprep.subr.bf16.mxu1 %v5345_v0  ;;  %v5380_v61 = vld [vmem:[%s6952_s0 + $0x484] ss:$12 sps:$4 sm:$0xff]  }
  0x47   :  { %794 = vmatpush1.bf16.msra.mxu0 %v5278_v50  ;;  %v5362_v50 = vld [vmem:[%s6952_s0 + $0x390] ss:$12 sps:$4 sm:$0xff]  }
  0x48   :  { %795 = vmatprep.subr.bf16.mxu0 %v5284_v51  ;;  %5057 = vmatpush3.bf16.msra.mxu1 %v5345_v0  ;;  %v5409_v51 = vld [vmem:[%s6952_s0 + $0x2d8] ss:$12 sps:$4 sm:$0xff]  }
  0x49   :  { %5058 = vmatprep.subr.bf16.mxu1 %v5349_v4  ;;  %v5384_v0 = vld [vmem:[%s6952_s0 + $0x46c] ss:$12 sps:$4 sm:$0xff]  }
  0x4b   :  { %796 = vmatpush1.bf16.msra.mxu0 %v5282_v53  ;;  %v5413_v53 = vld [vmem:[%s6952_s0 + $0x2c0] ss:$12 sps:$4 sm:$0xff]  }
  0x4c   :  { %797 = vmatprep.subr.bf16.mxu0 %v5288_v54  ;;  %5059 = vmatpush3.bf16.msra.mxu1 %v5349_v4  ;;  %v5366_v54 = vld [vmem:[%s6952_s0 + $0x378] ss:$12 sps:$4 sm:$0xff]   ;;  %v5382_v4 = vld [vmem:[%s6952_s0 + $0x468] ss:$12 sps:$4 sm:$0xff]  }
  0x4d   :  { %5060 = vmatprep.subr.bf16.mxu1 %v5353_v7 }
  0x4f   :  { %798 = vmatpush1.bf16.msra.mxu0 %v5286_v56  ;;  %v5417_v56 = vld [vmem:[%s6952_s0 + $0x2a8] ss:$12 sps:$4 sm:$0xff]  }
  0x50   :  { %799 = vmatprep.subr.bf16.mxu0 %v5292_v57  ;;  %5061 = vmatpush3.bf16.msra.mxu1 %v5353_v7  ;;  %v5370_v57 = vld [vmem:[%s6952_s0 + $0x360] ss:$12 sps:$4 sm:$0xff]   ;;  %v5386_v7 = vld [vmem:[%s6952_s0 + $0x450] ss:$12 sps:$4 sm:$0xff]  }
  0x51   :  { %5062 = vmatprep.subr.bf16.mxu1 %v5357_v11 }
  0x53   :  { %800 = vmatpush1.bf16.msra.mxu0 %v5290_v59  ;;  %v5421_v59 = vld [vmem:[%s6952_s0 + $0x3e0] ss:$12 sps:$4 sm:$0xff]  }
  0x54   :  { %1090 = vmatprep.subr.bf16.mxu0 %v5296_v60  ;;  %5063 = vmatpush3.bf16.msra.mxu1 %v5357_v11  ;;  %v5374_v60 = vld [vmem:[%s6952_s0 + $0x348] ss:$12 sps:$4 sm:$0xff]   ;;  %v5390_v11 = vld [vmem:[%s6952_s0 + $0x438] ss:$12 sps:$4 sm:$0xff]  }
  0x55   :  { %5064 = vmatprep.subr.bf16.mxu1 %v5361_v14 }
  0x56   :  { %4355 = vmatmul.mubr.msk.bf16.vlgmr.msra.gmra.mxu0 %vm172_vm0, %v5644_v8 }
  0x57   :  { %1091 = vmatpush1.bf16.msra.mxu0 %v5294_v62  ;;  %827 = vmatprep.mubr.bf16.mxu0 %v5593_v1  ;;  %v5425_v62 = vld [vmem:[%s6952_s0 + $0x3c8] ss:$12 sps:$4 sm:$0xff]  }
  0x58   :  { %1092 = vmatprep.subr.bf16.mxu0 %v5300_v63  ;;  %5065 = vmatpush3.bf16.msra.mxu1 %v5361_v14  ;;  %v5378_v63 = vld [vmem:[%s6952_s0 + $0x480] ss:$12 sps:$4 sm:$0xff]  }
  0x59   :  { %5070 = vmatprep.subr.bf16.mxu1 %v5365_v17  ;;  %v5400_v14 = vld [vmem:[%s6952_s0 + $0x40c] ss:$12 sps:$4 sm:$0xff]  }
  0x5b   :  { %1093 = vmatpush1.bf16.msra.mxu0 %v5298_v2  ;;  %5067 = vmatmul.mubr.msk.bf16.vlgmr.msra.gmra.mxu1 %vm172_vm0, %v5699_v24  ;;  %v6055_v2 = vld [vmem:[%s6953_s1] sm:$0xff]  }
  0x5c   :  { %1094 = vmatprep.subr.bf16.mxu0 %v5304_v3  ;;  %5071 = vmatpush3.bf16.msra.mxu1 %v5365_v17  ;;  %v5429_v3 = vld [vmem:[%s6952_s0 + $0x3b0] ss:$12 sps:$4 sm:$0xff]   ;;  %v5404_v17 = vld [vmem:[%s6952_s0 + $0x3f4] ss:$12 sps:$4 sm:$0xff]  }
  0x5d   :  { %5084 = vmatprep.mubr.msk.bf16.mxu1 %vm172_vm0, %v5644_v8  ;;  %5072 = vmatprep.subr.bf16.mxu1 %v5369_v20 }
  0x5e   :  { %4356 = vmatmul.mubr.msk.bf16.gmra.mxu0 %vm172_vm0, %v5699_v24 }
  0x5f   :  { %1095 = vmatpush1.bf16.msra.mxu0 %v5302_v5  ;;  %1120 = vmatprep.mubr.bf16.mxu0 %v5593_v1  ;;  %v5388_v5 = vld [vmem:[%s6952_s0 + $0x454] ss:$12 sps:$4 sm:$0xff]  }
  0x60   :  { %1096 = vmatprep.subr.bf16.mxu0 %v5308_v6  ;;  %5073 = vmatpush3.bf16.msra.mxu1 %v5369_v20  ;;  %v5433_v6 = vld [vmem:[%s6952_s0 + $0x398] ss:$12 sps:$4 sm:$0xff]  }
  0x61   :  { %5074 = vmatprep.subr.bf16.mxu1 %v5373_v23  ;;  %v5408_v20 = vld [vmem:[%s6952_s0 + $0x52c] ss:$12 sps:$4 sm:$0xff]  }
  0x63   :  { %1097 = vmatpush1.bf16.msra.mxu0 %v5306_v9  ;;  %v5392_v9 = vld [vmem:[%s6952_s0 + $0x43c] ss:$12 sps:$4 sm:$0xff]  }
  0x64   :  { %1098 = vmatprep.subr.bf16.mxu0 %v5312_v10  ;;  %5075 = vmatpush3.bf16.msra.mxu1 %v5373_v23  ;;  %v5436_v10 = vld [vmem:[%s6952_s0 + $0x380] ss:$12 sps:$4 sm:$0xff]  }
  0x65   :  { %5076 = vmatprep.subr.bf16.mxu1 %v5377_v27  ;;  %v5412_v23 = vld [vmem:[%s6952_s0 + $0x514] ss:$12 sps:$4 sm:$0xff]  }
  0x67   :  { %1099 = vmatpush1.bf16.msra.mxu0 %v5310_v12  ;;  %v5396_v12 = vld [vmem:[%s6952_s0 + $0x424] ss:$12 sps:$4 sm:$0xff]  }
  0x68   :  { %1100 = vmatprep.subr.bf16.mxu0 %v5316_v13  ;;  %5077 = vmatpush3.bf16.msra.mxu1 %v5377_v27  ;;  %v5394_v13 = vld [vmem:[%s6952_s0 + $0x420] ss:$12 sps:$4 sm:$0xff]   ;;  %v5410_v27 = vld [vmem:[%s6952_s0 + $0x510] ss:$12 sps:$4 sm:$0xff]  }
  0x69   :  { %5078 = vmatprep.subr.bf16.mxu1 %v5381_v30 }
  0x6b   :  { %1101 = vmatpush1.bf16.msra.mxu0 %v5314_v15  ;;  %v5442_v15 = vld [vmem:[%s6952_s0 + $0x350] ss:$12 sps:$4 sm:$0xff]  }
  0x6c   :  { %1102 = vmatprep.subr.bf16.mxu0 %v5320_v16  ;;  %5079 = vmatpush3.bf16.msra.mxu1 %v5381_v30  ;;  %v5398_v16 = vld [vmem:[%s6952_s0 + $0x408] ss:$12 sps:$4 sm:$0xff]   ;;  %v5414_v30 = vld [vmem:[%s6952_s0 + $0x4f8] ss:$12 sps:$4 sm:$0xff]  }
  0x6d   :  { %5080 = vmatprep.subr.bf16.mxu1 %v5385_v33 }
  0x6f   :  { %1103 = vmatpush1.bf16.msra.mxu0 %v5318_v18  ;;  %v5445_v18 = vld [vmem:[%s6952_s0 + $0x488] ss:$12 sps:$4 sm:$0xff]  }
  0x70   :  { %1393 = vmatprep.subr.bf16.mxu0 %v5324_v19  ;;  %5081 = vmatpush3.bf16.msra.mxu1 %v5385_v33  ;;  %v5402_v19 = vld [vmem:[%s6952_s0 + $0x3f0] ss:$12 sps:$4 sm:$0xff]   ;;  %v5418_v33 = vld [vmem:[%s6952_s0 + $0x4e0] ss:$12 sps:$4 sm:$0xff]  }
  0x71   :  { %5082 = vmatprep.subr.bf16.mxu1 %v5389_v36 }
  0x72   :  { %4416 = vmatmul.mubr.msk.bf16.vlgmr.msra.gmra.mxu0 %vm172_vm0, %v5644_v8 }
  0x73   :  { %1394 = vmatpush1.bf16.msra.mxu0 %v5322_v21  ;;  %1130 = vmatprep.mubr.bf16.mxu0 %v5593_v1  ;;  %v5448_v21 = vld [vmem:[%s6952_s0 + $0x470] ss:$12 sps:$4 sm:$0xff]  }
  0x74   :  { %1395 = vmatprep.subr.bf16.mxu0 %v5328_v22  ;;  %5083 = vmatpush3.bf16.msra.mxu1 %v5389_v36  ;;  %v5406_v22 = vld [vmem:[%s6952_s0 + $0x528] ss:$12 sps:$4 sm:$0xff]  }
  0x75   :  { %5088 = vmatprep.subr.bf16.mxu1 %v5393_v39  ;;  %v5422_v36 = vld [vmem:[%s6952_s0 + $0x4c8] ss:$12 sps:$4 sm:$0xff]  }
  0x77   :  { %1396 = vmatpush1.bf16.msra.mxu0 %v5326_v25  ;;  %5085 = vmatmul.mubr.msk.bf16.vlgmr.msra.gmra.mxu1 %vm172_vm0, %v5699_v24  ;;  %v6131_v25 = vld [vmem:[%s6953_s1 + $0x8] sm:$0xff]  }
  0x78   :  { %1397 = vmatprep.subr.bf16.mxu0 %v5332_v26  ;;  %5089 = vmatpush3.bf16.msra.mxu1 %v5393_v39  ;;  %v5451_v26 = vld [vmem:[%s6952_s0 + $0x458] ss:$12 sps:$4 sm:$0xff]   ;;  %v5426_v39 = vld [vmem:[%s6952_s0 + $0x4b0] ss:$12 sps:$4 sm:$0xff]  }
  0x79   :  { %5102 = vmatprep.mubr.msk.bf16.mxu1 %vm172_vm0, %v5644_v8  ;;  %5090 = vmatprep.subr.bf16.mxu1 %v5397_v42 }
  0x7a   :  { %4417 = vmatmul.mubr.msk.bf16.gmra.mxu0 %vm172_vm0, %v5699_v24 }
  0x7b   :  { %1398 = vmatpush1.bf16.msra.mxu0 %v5330_v28  ;;  %1423 = vmatprep.mubr.bf16.mxu0 %v5593_v1  ;;  %v5416_v28 = vld [vmem:[%s6952_s0 + $0x4fc] ss:$12 sps:$4 sm:$0xff]  }
  0x7c   :  { %1399 = vmatprep.subr.bf16.mxu0 %v5336_v29  ;;  %5091 = vmatpush3.bf16.msra.mxu1 %v5397_v42  ;;  %v5454_v29 = vld [vmem:[%s6952_s0 + $0x440] ss:$12 sps:$4 sm:$0xff]   ;;  %v5430_v42 = vld [vmem:[%s6952_s0 + $0x498] ss:$12 sps:$4 sm:$0xff]  }
  0x7d   :  { %5092 = vmatprep.subr.bf16.mxu1 %v5401_v45 }
  0x7f   :  { %1400 = vmatpush1.bf16.msra.mxu0 %v5334_v31  ;;  %v5420_v31 = vld [vmem:[%s6952_s0 + $0x4e4] ss:$12 sps:$4 sm:$0xff]  }
  0x80   :  { %1401 = vmatprep.subr.bf16.mxu0 %v5340_v32  ;;  %5093 = vmatpush3.bf16.msra.mxu1 %v5401_v45  ;;  %v5457_v32 = vld [vmem:[%s6952_s0 + $0x428] ss:$12 sps:$4 sm:$0xff]   ;;  %v5461_v45 = vld [vmem:[%s6952_s0 + $0x518] ss:$12 sps:$4 sm:$0xff]  }
  0x81   :  { %5094 = vmatprep.subr.bf16.mxu1 %v5405_v48 }
  0x83   :  { %1402 = vmatpush1.bf16.msra.mxu0 %v5338_v34  ;;  %v5424_v34 = vld [vmem:[%s6952_s0 + $0x4cc] ss:$12 sps:$4 sm:$0xff]  }
  0x84   :  { %1403 = vmatprep.subr.bf16.mxu0 %v5344_v35  ;;  %5095 = vmatpush3.bf16.msra.mxu1 %v5405_v48  ;;  %v5458_v35 = vld [vmem:[%s6952_s0 + $0x410] ss:$12 sps:$4 sm:$0xff]  }
  0x85   :  { %5096 = vmatprep.subr.bf16.mxu1 %v5409_v51  ;;  %v6213_v48 = vld [vmem:[%s6954_s2 + $0x70] sm:$0xff]  }
  0x87   :  { %1404 = vmatpush1.bf16.msra.mxu0 %v5342_v37  ;;  %v5428_v37 = vld [vmem:[%s6952_s0 + $0x4b4] ss:$12 sps:$4 sm:$0xff]  }
  0x88   :  { %1405 = vmatprep.subr.bf16.mxu0 %v5348_v38  ;;  %5097 = vmatpush3.bf16.msra.mxu1 %v5409_v51  ;;  %v5459_v38 = vld [vmem:[%s6952_s0 + $0x3f8] ss:$12 sps:$4 sm:$0xff]   ;;  %v5462_v51 = vld [vmem:[%s6952_s0 + $0x500] ss:$12 sps:$4 sm:$0xff]  }
  0x89   :  { %5098 = vmatprep.subr.bf16.mxu1 %v5413_v53 }
  0x8b   :  { %1406 = vmatpush1.bf16.msra.mxu0 %v5346_v40  ;;  %v5432_v40 = vld [vmem:[%s6952_s0 + $0x49c] ss:$12 sps:$4 sm:$0xff]  }
  0x8c   :  { %1696 = vmatprep.subr.bf16.mxu0 %v5352_v41  ;;  %5099 = vmatpush3.bf16.msra.mxu1 %v5413_v53  ;;  %v5460_v41 = vld [vmem:[%s6952_s0 + $0x530] ss:$12 sps:$4 sm:$0xff]  }
  0x8d   :  { %5100 = vmatprep.subr.bf16.mxu1 %v5417_v56 }
  0x8e   :  { %4477 = vmatmul.mubr.msk.bf16.vlgmr.msra.gmra.mxu0 %vm172_vm0, %v5644_v8  ;;  %v5358_v8 = vld [vmem:[%s6952_s0 + $0x3a8] ss:$12 sps:$4 sm:$0xff]  }
  0x8f   :  { %1697 = vmatpush1.bf16.msra.mxu0 %v5350_v43  ;;  %1433 = vmatprep.mubr.bf16.mxu0 %v5593_v1  ;;  %v6197_v43 = vld [vmem:[%s6954_s2 + $0x78] sm:$0xff]  }
  0x90   :  { %1698 = vmatprep.subr.bf16.mxu0 %v5356_v44  ;;  %5101 = vmatpush3.bf16.msra.mxu1 %v5417_v56 }
  0x91   :  { %5106 = vmatprep.subr.bf16.mxu1 %v5421_v59 }
  0x93   :  { %1699 = vmatpush1.bf16.msra.mxu0 %v5354_v46  ;;  %5103 = vmatmul.mubr.msk.bf16.vlgmr.msra.gmra.mxu1 %vm172_vm0, %v5699_v24 }
  0x94   :  { %1700 = vmatprep.subr.bf16.mxu0 %v5360_v47  ;;  %5107 = vmatpush3.bf16.msra.mxu1 %v5421_v59  ;;  %v6207_v47 = vld [vmem:[%s6954_s2 + $0x38] sm:$0xff]  }
  0x95   :  { %5120 = vmatprep.mubr.msk.bf16.mxu1 %vm172_vm0, %v6055_v2  ;;  %5108 = vmatprep.subr.bf16.mxu1 %v5425_v62 }
  0x96   :  { %4478 = vmatmul.mubr.msk.bf16.gmra.mxu0 %vm172_vm0, %v5699_v24 }
  0x97   :  { %1701 = vmatpush1.bf16.msra.mxu0 %v5358_v8  ;;  %1726 = vmatprep.mubr.bf16.mxu0 %v5593_v1 }
  0x98   :  { %1702 = vmatprep.subr.bf16.mxu0 %v5364_v49  ;;  %5109 = vmatpush3.bf16.msra.mxu1 %v5425_v62 }
  0x99   :  { %5110 = vmatprep.subr.bf16.mxu1 %v5429_v3 }
  0x9b   :  { %1703 = vmatpush1.bf16.msra.mxu0 %v5362_v50 }
  0x9c   :  { %1704 = vmatprep.subr.bf16.mxu0 %v5368_v52  ;;  %5111 = vmatpush3.bf16.msra.mxu1 %v5429_v3  ;;  %v6228_v52 = vld [vmem:[%s6954_s2 + $0x30] sm:$0xff]   ;;  %v6267_v3 = vld [vmem:[%s6954_s2 + $0x20] sm:$0xff]  }
  0x9d   :  { %5112 = vmatprep.subr.bf16.mxu1 %v5433_v6 }
  0x9f   :  { %1705 = vmatpush1.bf16.msra.mxu0 %v5366_v54  ;;  %v6235_v54 = vld [vmem:[%s6954_s2 + $0x68] sm:$0xff]  }
  0xa0   :  { %1706 = vmatprep.subr.bf16.mxu0 %v5372_v55  ;;  %5113 = vmatpush3.bf16.msra.mxu1 %v5433_v6 }
  0xa1   :  { %5114 = vmatprep.subr.bf16.mxu1 %v5436_v10 }
  0xa3   :  { %1707 = vmatpush1.bf16.msra.mxu0 %v5370_v57 }
  0xa4   :  { %1708 = vmatprep.subr.bf16.mxu0 %v5376_v58  ;;  %5115 = vmatpush3.bf16.msra.mxu1 %v5436_v10  ;;  %v5463_v58 = vld [vmem:[%s6952_s0 + $0x4e8] ss:$12 sps:$4 sm:$0xff]   ;;  %v6284_v10 = vld [vmem:[%s6954_s2 + $0x18] sm:$0xff]  }
  0xa7   :  { %1709 = vmatpush1.bf16.msra.mxu0 %v5374_v60  ;;  %v6254_v60 = vld [vmem:[%s6954_s2 + $0x60] sm:$0xff]  }
  0xa8   :  { %1999 = vmatprep.subr.bf16.mxu0 %v5380_v61 }
  0xaa   :  { %4538 = vmatmul.mubr.msk.bf16.vlgmr.msra.gmra.mxu0 %vm172_vm0, %v6055_v2 }
  0xab   :  { %2000 = vmatpush1.bf16.msra.mxu0 %v5378_v63  ;;  %1736 = vmatprep.mubr.bf16.mxu0 %v5593_v1 }
  0xac   :  { %2001 = vmatprep.subr.bf16.mxu0 %v5384_v0 }
  0xaf   :  { %2002 = vmatpush1.bf16.msra.mxu0 %v5382_v4 }
  0xb0   :  { %2003 = vmatprep.subr.bf16.mxu0 %v5388_v5  ;;  %v6275_v5 = vld [vmem:[%s6954_s2 + $0x58] sm:$0xff]  }
  0xb2   :  { %4539 = vmatmul.mubr.msk.bf16.gmra.mxu0 %vm172_vm0, %v5699_v24  ;;  %v5439_v24 = vld [vmem:[%s6952_s0 + $0x368] ss:$12 sps:$4 sm:$0xff]  }
  0xb3   :  { %2004 = vmatpush1.bf16.msra.mxu0 %v5386_v7  ;;  %2029 = vmatprep.mubr.bf16.mxu0 %v5593_v1 }
  0xb4   :  { %2005 = vmatprep.subr.bf16.mxu0 %v5392_v9  ;;  %5116 = vmatprep.subr.bf16.mxu1 %v5439_v24  ;;  %v5465_v9 = vld [vmem:[%s6952_s0 + $0x4b8] ss:$12 sps:$4 sm:$0xff]  }
  0xb5   :  { %5117 = vmatpush3.bf16.msra.mxu1 %v5439_v24  ;;  %v6299_v24 = vld [vmem:[%s6954_s2 + $0x10] sm:$0xff]  }
  0xb6   :  { %5118 = vmatprep.subr.bf16.mxu1 %v5442_v15 }
  0xb7   :  { %2006 = vmatpush1.bf16.msra.mxu0 %v5390_v11  ;;  %v6290_v11 = vld [vmem:[%s6954_s2 + $0x50] sm:$0xff]  }
  0xb8   :  { %2007 = vmatprep.subr.bf16.mxu0 %v5396_v12  ;;  %v5466_v12 = vld [vmem:[%s6952_s0 + $0x4a0] ss:$12 sps:$4 sm:$0xff]  }
  0xb9   :  { %5119 = vmatpush3.bf16.msra.mxu1 %v5442_v15  ;;  %v6317_v15 = vld [vmem:[%s6954_s2 + $0x40] sm:$0xff]  }
  0xba   :  { %5124 = vmatprep.subr.bf16.mxu1 %v5445_v18 }
  0xbb   :  { %2008 = vmatpush1.bf16.msra.mxu0 %v5394_v13  ;;  %v6305_v13 = vld [vmem:[%s6954_s2 + $0x48] sm:$0xff]  }
  0xbc   :  { %2009 = vmatprep.subr.bf16.mxu0 %v5400_v14  ;;  %5121 = vmatmul.mubr.msk.bf16.vlgmr.msra.gmra.mxu1 %vm172_vm0, %v6131_v25  ;;  %v6311_v14 = vld [vmem:[%s6954_s2 + $0x8] sm:$0xff]  }
  0xbd   :  { %5125 = vmatpush3.bf16.msra.mxu1 %v5445_v18  ;;  %5138 = vmatprep.mubr.msk.bf16.mxu1 %vm172_vm0, %v6055_v2 }
  0xbe   :  { %5126 = vmatprep.subr.bf16.mxu1 %v5448_v21 }
  0xbf   :  { %2010 = vmatpush1.bf16.msra.mxu0 %v5398_v16 }
  0xc0   :  { %2011 = vmatprep.subr.bf16.mxu0 %v5404_v17 }
  0xc1   :  { %5127 = vmatpush3.bf16.msra.mxu1 %v5448_v21  ;;  %v6324_v21 = vld [vmem:[%s6954_s2] sm:$0xff]  }
  0xc2   :  { %5128 = vmatprep.subr.bf16.mxu1 %v5451_v26 }
  0xc3   :  { %2012 = vmatpush1.bf16.msra.mxu0 %v5402_v19 }
  0xc4   :  { %2302 = vmatprep.subr.bf16.mxu0 %v5408_v20 }
  0xc5   :  { %5129 = vmatpush3.bf16.msra.mxu1 %v5451_v26 }
  0xc6   :  { %4599 = vmatmul.mubr.msk.bf16.vlgmr.msra.gmra.mxu0 %vm172_vm0, %v6055_v2  ;;  %5130 = vmatprep.subr.bf16.mxu1 %v5454_v29 }
  0xc7   :  { %2303 = vmatpush1.bf16.msra.mxu0 %v5406_v22  ;;  %2039 = vmatprep.mubr.bf16.mxu0 %v5593_v1 }
  0xc8   :  { %2304 = vmatprep.subr.bf16.mxu0 %v5412_v23 }
  0xc9   :  { %5131 = vmatpush3.bf16.msra.mxu1 %v5454_v29 }
  0xca   :  { %5132 = vmatprep.subr.bf16.mxu1 %v5457_v32 }
  0xcb   :  { %2305 = vmatpush1.bf16.msra.mxu0 %v5410_v27 }
  0xcc   :  { %2306 = vmatprep.subr.bf16.mxu0 %v5416_v28 }
  0xcd   :  { %5133 = vmatpush3.bf16.msra.mxu1 %v5457_v32 }
  0xce   :  { %4600 = vmatmul.mubr.msk.bf16.gmra.mxu0 %vm172_vm0, %v6131_v25  ;;  %5134 = vmatprep.subr.bf16.mxu1 %v5458_v35 }
  0xcf   :  { %2307 = vmatpush1.bf16.msra.mxu0 %v5414_v30  ;;  %2332 = vmatprep.mubr.bf16.mxu0 %v5593_v1 }
  0xd0   :  { %2308 = vmatprep.subr.bf16.mxu0 %v5420_v31 }
  0xd1   :  { %5135 = vmatpush3.bf16.msra.mxu1 %v5458_v35 }
  0xd2   :  { %5136 = vmatprep.subr.bf16.mxu1 %v5459_v38 }
  0xd3   :  { %2309 = vmatpush1.bf16.msra.mxu0 %v5418_v33 }
  0xd4   :  { %2310 = vmatprep.subr.bf16.mxu0 %v5424_v34 }
  0xd5   :  { %5137 = vmatpush3.bf16.msra.mxu1 %v5459_v38 }
  0xd6   :  { %5142 = vmatprep.subr.bf16.mxu1 %v5460_v41 }
  0xd7   :  { %2311 = vmatpush1.bf16.msra.mxu0 %v5422_v36 }
  0xd8   :  { %2312 = vmatprep.subr.bf16.mxu0 %v5428_v37  ;;  %5139 = vmatmul.mubr.msk.bf16.vlgmr.msra.gmra.mxu1 %vm172_vm0, %v6131_v25 }
  0xd9   :  { %5143 = vmatpush3.bf16.msra.mxu1 %v5460_v41  ;;  %5156 = vmatprep.mubr.msk.bf16.mxu1 %vm172_vm0, %v6055_v2 }
  0xda   :  { %5144 = vmatprep.subr.bf16.mxu1 %v5461_v45 }
  0xdb   :  { %2313 = vmatpush1.bf16.msra.mxu0 %v5426_v39 }
  0xdc   :  { %2314 = vmatprep.subr.bf16.mxu0 %v5432_v40 }
  0xdd   :  { %5145 = vmatpush3.bf16.msra.mxu1 %v5461_v45 }
  0xde   :  { %v213_v44 = vpop.f32.mrf.mxu0  ;;  %5146 = vmatprep.subr.bf16.mxu1 %v5462_v51 }
  0xdf   :  { %v6202_v46 = vmul.f32 %v213_v44, %v213_v44  ;;  %2315 = vmatpush1.bf16.msra.mxu0 %v5430_v42 }
  0xe0   :  { %v215_v8 = vpop.f32.mrf.mxu0  ;;  %4880 = vmatprep.subr.bf16.mxu0 %v6197_v43 }
  0xe1   :  { %v282_v49 = vmul.f32 %v215_v8, %v215_v8  ;;  %5147 = vmatpush3.bf16.msra.mxu1 %v5462_v51 }
  0xe2   :  { %v217_v50 = vpop.f32.mrf.mxu0  ;;  %4660 = vmatmul.mubr.msk.bf16.vlgmr.msra.gmra.mxu0 %vm172_vm0, %v6055_v2  ;;  %5148 = vmatprep.subr.bf16.mxu1 %v5463_v58  ;;  %v5464_v2 = vld [vmem:[%s6952_s0 + $0x4d0] ss:$12 sps:$4 sm:$0xff]  }
  0xe3   :  { %4881 = vmatpush3.bf16.msra.mxu0 %v6207_v47  ;;  %2342 = vmatprep.mubr.bf16.mxu0 %v5593_v1  ;;  %v6237_v55 = vmul.f32 %v217_v50, %v217_v50  ;;  %v6246_v1 = vld [vmem:[%s6954_s2 + $0x28] sm:$0xff]   ;;  %v5032_v16 = vpop.f32.mrf.mxu1 }
  0xe4   :  { %v219_v53 = vpop.f32.mrf.mxu0  ;;  %4882 = vmatprep.subr.bf16.mxu0 %v6213_v48  ;;  %v289_v17 = vmul.f32 %v5032_v16, %v5032_v16 }
  0xe5   :  { %v285_v56 = vmul.f32 %v219_v53, %v219_v53  ;;  %5149 = vmatpush3.bf16.msra.mxu1 %v5463_v58  ;;  %v266_v19 = vpop.f32.mrf.mxu1  ;;  %v5562_v35 = vpack.c.bf16 %v6237_v55, %v6202_v46 }
  0xe6   :  { %v223_v57 = vpop.f32.mrf.mxu0  ;;  %5150 = vmatprep.subr.bf16.mxu1 %v5464_v2  ;;  %v4749_v22 = vpack.c.bf16 %v289_v17, %v289_v17  ;;  %v283_v23 = vmul.f32 %v266_v19, %v266_v19 }
  0xe7   :  { %4883 = vmatpush3.bf16.msra.mxu0 %v6228_v52  ;;  %v6248_v59 = vmul.f32 %v223_v57, %v223_v57  ;;  %v5561_v63 = vpack.c.bf16 %v285_v56, %v282_v49  ;;  %v5033_v27 = vpop.f32.mrf.mxu1 }
  0xe8   :  { %4884 = vmatprep.subr.bf16.mxu0 %v6235_v54  ;;  %v225_v61 = vpop.f32.mrf.mxu0  ;;  %338 = vst [vmem:[#allocation2 + $0x20] sm:$0xf] %v4749_v22  ;;  %v4745_v29 = vpack.c.bf16 %v283_v23, %v283_v23  ;;  %v292_v30 = vmul.f32 %v5033_v27, %v5033_v27 }
  0xe9   :  { %v6256_v62 = vmul.f32 %v225_v61, %v225_v61  ;;  %5151 = vmatpush3.bf16.msra.mxu1 %v5464_v2  ;;  %v269_v32 = vpop.f32.mrf.mxu1 }
  0xea   :  { %4661 = vmatmul.mubr.msk.bf16.gmra.mxu0 %vm172_vm0, %v6131_v25  ;;  %v227_v0 = vpop.f32.mrf.mxu0  ;;  %5152 = vmatprep.subr.bf16.mxu1 %v5465_v9  ;;  %334 = vst [vmem:[#allocation2 + $0x8] sm:$0xf] %v4745_v29  ;;  %v4751_v33 = vpack.c.bf16 %v292_v30, %v292_v30  ;;  %v286_v34 = vmul.f32 %v269_v32, %v269_v32 }
  0xeb   :  { %4885 = vmatpush3.bf16.msra.mxu0 %v6246_v1  ;;  %v6269_v4 = vmul.f32 %v227_v0, %v227_v0  ;;  %3006 = vmatprep.mubr.bf16.mxu0 %v5561_v63 }
  0xec   :  { %4886 = vmatprep.subr.bf16.mxu0 %v6254_v60  ;;  %v229_v6 = vpop.f32.mrf.mxu0  ;;  %340 = vst [vmem:[#allocation2 + $0x2c] sm:$0xf] %v4751_v33  ;;  %v4747_v39 = vpack.c.bf16 %v286_v34, %v286_v34 }
  0xed   :  { %v291_v7 = vmul.f32 %v229_v6, %v229_v6  ;;  %5153 = vmatpush3.bf16.msra.mxu1 %v5465_v9 }
  0xee   :  { %5154 = vmatprep.subr.bf16.mxu1 %v5466_v12  ;;  %336 = vst [vmem:[#allocation2 + $0x14] sm:$0xf] %v4747_v39 }
  0xef   :  { %4887 = vmatpush3.bf16.msra.mxu0 %v6267_v3  ;;  %v5563_v38 = vpack.c.bf16 %v291_v7, %v6256_v62 }
  0xf0   :  { %4888 = vmatprep.subr.bf16.mxu0 %v6275_v5 }
  0xf1   :  { %5155 = vmatpush3.bf16.msra.mxu1 %v5466_v12 }
  0xf2   :  { %5208 = vmatprep.subr.bf16.mxu1 %v6197_v43 }
  0xf3   :  { %4889 = vmatpush3.bf16.msra.mxu0 %v6284_v10 }
  0xf4   :  { %4890 = vmatprep.subr.bf16.mxu0 %v6290_v11  ;;  %5157 = vmatmul.mubr.msk.bf16.vlgmr.msra.gmra.mxu1 %vm172_vm0, %v6131_v25 }
  0xf5   :  { %5216 = vmatpush3.bf16.msra.mxu1 %v6207_v47  ;;  %v5564_v47 = vpack.c.bf16 %v6269_v4, %v6248_v59 }
  0xf6   :  { %5209 = vmatprep.subr.bf16.mxu1 %v6213_v48 }
  0xf7   :  { %4891 = vmatpush3.bf16.msra.mxu0 %v6299_v24 }
  0xf8   :  { %4892 = vmatprep.subr.bf16.mxu0 %v6305_v13 }
  0xf9   :  { %5217 = vmatpush3.bf16.msra.mxu1 %v6228_v52 }
  0xfa   :  { %v516_v18 = vpop.f32.mrf.mxu0  ;;  %5210 = vmatprep.subr.bf16.mxu1 %v6235_v54 }
  0xfb   :  { %v584_v20 = vmul.f32 %v516_v18, %v516_v18  ;;  %4893 = vmatpush3.bf16.msra.mxu0 %v6311_v14 }
  0xfc   :  { %v518_v26 = vpop.f32.mrf.mxu0  ;;  %4894 = vmatprep.subr.bf16.mxu0 %v6317_v15 }
  0xfd   :  { %v585_v28 = vmul.f32 %v518_v26, %v518_v26  ;;  %5218 = vmatpush3.bf16.msra.mxu1 %v6246_v1 }
  0xfe   :  { %v520_v31 = vpop.f32.mrf.mxu0  ;;  %5211 = vmatprep.subr.bf16.mxu1 %v6254_v60 }
  0xff   :  { %4895 = vmatpush3.bf16.msra.mxu0 %v6324_v21  ;;  %v587_v36 = vmul.f32 %v520_v31, %v520_v31  ;;  %v5050_v51 = vpop.f32.mrf.mxu1 }
 0x100   :  { %v522_v25 = vpop.f32.mrf.mxu0  ;;  %v592_v52 = vmul.f32 %v5050_v51, %v5050_v51 }
 0x101   :  { %v588_v37 = vmul.f32 %v522_v25, %v522_v25  ;;  %5219 = vmatpush3.bf16.msra.mxu1 %v6267_v3  ;;  %v5567_v50 = vpack.c.bf16 %v587_v36, %v584_v20  ;;  %v569_v54 = vpop.f32.mrf.mxu1 }
 0x102   :  { %3007 = vmatmul.mubr.bf16.vlgmr.msra.gmra.mxu0 %v5562_v35  ;;  %v526_v40 = vpop.f32.mrf.mxu0  ;;  %5212 = vmatprep.subr.bf16.mxu1 %v6275_v5  ;;  %v4757_v56 = vpack.c.bf16 %v592_v52, %v592_v52  ;;  %v586_v57 = vmul.f32 %v569_v54, %v569_v54 }
 0x103   :  { %3014 = vmatprep.mubr.bf16.mxu0 %v5563_v38  ;;  %v590_v41 = vmul.f32 %v526_v40, %v526_v40  ;;  %v5565_v48 = vpack.c.bf16 %v588_v37, %v585_v28  ;;  %v5051_v59 = vpop.f32.mrf.mxu1 }
 0x104   :  { %v528_v42 = vpop.f32.mrf.mxu0  ;;  %641 = vst [vmem:[#allocation2 + $0x50] sm:$0xf] %v4757_v56  ;;  %v4753_v61 = vpack.c.bf16 %v586_v57, %v586_v57  ;;  %v595_v62 = vmul.f32 %v5051_v59, %v5051_v59 }
 0x105   :  { %v591_v43 = vmul.f32 %v528_v42, %v528_v42  ;;  %5220 = vmatpush3.bf16.msra.mxu1 %v6284_v10  ;;  %v572_v0 = vpop.f32.mrf.mxu1  ;;  %v6353_v10 = vld [vmem:[%s6954_s2 + $0xb8] sm:$0xff]  }
 0x106   :  { %v530_v44 = vpop.f32.mrf.mxu0  ;;  %5213 = vmatprep.subr.bf16.mxu1 %v6290_v11  ;;  %637 = vst [vmem:[#allocation2 + $0x38] sm:$0xf] %v4753_v61  ;;  %v4759_v2 = vpack.c.bf16 %v595_v62, %v595_v62  ;;  %v589_v3 = vmul.f32 %v572_v0, %v572_v0 }
 0x107   :  { %v593_v45 = vmul.f32 %v530_v44, %v530_v44 }
 0x108   :  { %v532_v46 = vpop.f32.mrf.mxu0  ;;  %643 = vst [vmem:[#allocation2 + $0x5c] sm:$0xf] %v4759_v2  ;;  %v4755_v7 = vpack.c.bf16 %v589_v3, %v589_v3 }
 0x109   :  { %v594_v8 = vmul.f32 %v532_v46, %v532_v46  ;;  %5221 = vmatpush3.bf16.msra.mxu1 %v6299_v24  ;;  %v5568_v1 = vpack.c.bf16 %v593_v45, %v590_v41 }
 0x10a   :  { %3015 = vmatmul.mubr.bf16.gmra.mxu0 %v5564_v47  ;;  %5214 = vmatprep.subr.bf16.mxu1 %v6305_v13  ;;  %639 = vst [vmem:[#allocation2 + $0x44] sm:$0xf] %v4755_v7 }
 0x10b   :  { %3022 = vmatprep.mubr.bf16.mxu0 %v5565_v48  ;;  %v5566_v49 = vpack.c.bf16 %v594_v8, %v591_v43 }
 0x10d   :  { %5222 = vmatpush3.bf16.msra.mxu1 %v6311_v14 }
 0x10e   :  { %5215 = vmatprep.subr.bf16.mxu1 %v6317_v15 }
 0x111   :  { %5223 = vmatpush3.bf16.msra.mxu1 %v6324_v21 }
 0x112   :  { %3023 = vmatmul.mubr.bf16.gmra.mxu0 %v5567_v50  ;;  %5160 = vmatprep.subr.bf16.mxu1 %v6353_v10 }
 0x113   :  { %3030 = vmatprep.mubr.bf16.mxu0 %v5566_v49 }
 0x116   :  { %v819_v53 = vpop.f32.mrf.mxu0 }
 0x117   :  { %v887_v55 = vmul.f32 %v819_v53, %v819_v53 }
 0x118   :  { %v821_v58 = vpop.f32.mrf.mxu0 }
 0x119   :  { %v888_v60 = vmul.f32 %v821_v58, %v821_v58 }
 0x11a   :  { %v823_v63 = vpop.f32.mrf.mxu0  ;;  %3031 = vmatmul.mubr.bf16.gmra.mxu0 %v5568_v1 }
 0x11b   :  { %v890_v5 = vmul.f32 %v823_v63, %v823_v63  ;;  %v5068_v21 = vpop.f32.mrf.mxu1 }
 0x11c   :  { %v825_v4 = vpop.f32.mrf.mxu0  ;;  %v895_v22 = vmul.f32 %v5068_v21, %v5068_v21 }
 0x11d   :  { %v891_v6 = vmul.f32 %v825_v4, %v825_v4  ;;  %v5570_v14 = vpack.c.bf16 %v890_v5, %v887_v55  ;;  %v872_v26 = vpop.f32.mrf.mxu1 }
 0x11e   :  { %v829_v9 = vpop.f32.mrf.mxu0  ;;  %v4765_v28 = vpack.c.bf16 %v895_v22, %v895_v22  ;;  %v889_v29 = vmul.f32 %v872_v26, %v872_v26 }
 0x11f   :  { %v893_v11 = vmul.f32 %v829_v9, %v829_v9  ;;  %v5569_v13 = vpack.c.bf16 %v891_v6, %v888_v60  ;;  %v5069_v31 = vpop.f32.mrf.mxu1 }
 0x120   :  { %v831_v12 = vpop.f32.mrf.mxu0  ;;  %944 = vst [vmem:[#allocation2 + $0x80] sm:$0xf] %v4765_v28  ;;  %v4761_v33 = vpack.c.bf16 %v889_v29, %v889_v29  ;;  %v898_v34 = vmul.f32 %v5069_v31, %v5069_v31 }
 0x121   :  { %v894_v24 = vmul.f32 %v831_v12, %v831_v12  ;;  %3038 = vmatprep.mubr.bf16.mxu0 %v5569_v13  ;;  %v875_v25 = vpop.f32.mrf.mxu1 }
 0x122   :  { %v833_v15 = vpop.f32.mrf.mxu0  ;;  %3039 = vmatmul.mubr.bf16.gmra.mxu0 %v5570_v14  ;;  %940 = vst [vmem:[#allocation2 + $0x68] sm:$0xf] %v4761_v33  ;;  %v4767_v36 = vpack.c.bf16 %v898_v34, %v898_v34  ;;  %v892_v37 = vmul.f32 %v875_v25, %v875_v25 }
 0x123   :  { %v896_v16 = vmul.f32 %v833_v15, %v833_v15 }
 0x124   :  { %v835_v17 = vpop.f32.mrf.mxu0  ;;  %946 = vst [vmem:[#allocation2 + $0x8c] sm:$0xf] %v4767_v36  ;;  %v4763_v41 = vpack.c.bf16 %v892_v37, %v892_v37 }
 0x125   :  { %v897_v18 = vmul.f32 %v835_v17, %v835_v17  ;;  %v5572_v20 = vpack.c.bf16 %v896_v16, %v893_v11 }
 0x126   :  { %942 = vst [vmem:[#allocation2 + $0x74] sm:$0xf] %v4763_v41 }
 0x127   :  { %v5571_v19 = vpack.c.bf16 %v897_v18, %v894_v24 }
 0x129   :  { %3046 = vmatprep.mubr.bf16.mxu0 %v5571_v19 }
 0x12a   :  { %3047 = vmatmul.mubr.bf16.gmra.mxu0 %v5572_v20 }
 0x132   :  { %v1122_v23 = vpop.f32.mrf.mxu0 }
 0x133   :  { %v1190_v27 = vmul.f32 %v1122_v23, %v1122_v23 }
 0x134   :  { %v1124_v30 = vpop.f32.mrf.mxu0 }
 0x135   :  { %v1191_v32 = vmul.f32 %v1124_v30, %v1124_v30 }
 0x136   :  { %v1126_v35 = vpop.f32.mrf.mxu0 }
 0x137   :  { %v1193_v39 = vmul.f32 %v1126_v35, %v1126_v35  ;;  %v5086_v53 = vpop.f32.mrf.mxu1 }
 0x138   :  { %v1128_v38 = vpop.f32.mrf.mxu0  ;;  %v1198_v54 = vmul.f32 %v5086_v53, %v5086_v53 }
 0x139   :  { %v1194_v40 = vmul.f32 %v1128_v38, %v1128_v38  ;;  %v5574_v47 = vpack.c.bf16 %v1193_v39, %v1190_v27  ;;  %v1175_v56 = vpop.f32.mrf.mxu1 }
 0x13a   :  { %v1132_v42 = vpop.f32.mrf.mxu0  ;;  %v4773_v58 = vpack.c.bf16 %v1198_v54, %v1198_v54  ;;  %v1192_v1 = vmul.f32 %v1175_v56, %v1175_v56 }
 0x13b   :  { %v1196_v43 = vmul.f32 %v1132_v42, %v1132_v42  ;;  %v5573_v46 = vpack.c.bf16 %v1194_v40, %v1191_v32  ;;  %v5087_v60 = vpop.f32.mrf.mxu1 }
 0x13c   :  { %v1134_v44 = vpop.f32.mrf.mxu0  ;;  %1247 = vst [vmem:[#allocation2 + $0xb0] sm:$0xf] %v4773_v58  ;;  %v4769_v62 = vpack.c.bf16 %v1192_v1, %v1192_v1  ;;  %v1201_v63 = vmul.f32 %v5087_v60, %v5087_v60 }
 0x13d   :  { %v1197_v45 = vmul.f32 %v1134_v44, %v1134_v44  ;;  %3054 = vmatprep.mubr.bf16.mxu0 %v5573_v46  ;;  %v1178_v2 = vpop.f32.mrf.mxu1 }
 0x13e   :  { %v1136_v8 = vpop.f32.mrf.mxu0  ;;  %3055 = vmatmul.mubr.bf16.gmra.mxu0 %v5574_v47  ;;  %1243 = vst [vmem:[#allocation2 + $0x98] sm:$0xf] %v4769_v62  ;;  %v4775_v3 = vpack.c.bf16 %v1201_v63, %v1201_v63  ;;  %v1195_v4 = vmul.f32 %v1178_v2, %v1178_v2 }
 0x13f   :  { %v1199_v48 = vmul.f32 %v1136_v8, %v1136_v8 }
 0x140   :  { %v1138_v49 = vpop.f32.mrf.mxu0  ;;  %1249 = vst [vmem:[#allocation2 + $0xbc] sm:$0xf] %v4775_v3  ;;  %v4771_v9 = vpack.c.bf16 %v1195_v4, %v1195_v4 }
 0x141   :  { %v1200_v50 = vmul.f32 %v1138_v49, %v1138_v49  ;;  %v5576_v52 = vpack.c.bf16 %v1199_v48, %v1196_v43 }
 0x142   :  { %1245 = vst [vmem:[#allocation2 + $0xa4] sm:$0xf] %v4771_v9 }
 0x143   :  { %v5575_v51 = vpack.c.bf16 %v1200_v50, %v1197_v45 }
 0x145   :  { %3062 = vmatprep.mubr.bf16.mxu0 %v5575_v51 }
 0x146   :  { %3063 = vmatmul.mubr.bf16.gmra.mxu0 %v5576_v52 }
 0x14e   :  { %v1425_v55 = vpop.f32.mrf.mxu0 }
 0x14f   :  { %v1493_v57 = vmul.f32 %v1425_v55, %v1425_v55 }
 0x150   :  { %v1427_v59 = vpop.f32.mrf.mxu0 }
 0x151   :  { %v1494_v61 = vmul.f32 %v1427_v59, %v1427_v59 }
 0x152   :  { %v1429_v0 = vpop.f32.mrf.mxu0 }
 0x153   :  { %v1496_v6 = vmul.f32 %v1429_v0, %v1429_v0  ;;  %v5104_v22 = vpop.f32.mrf.mxu1 }
 0x154   :  { %v1431_v5 = vpop.f32.mrf.mxu0  ;;  %v1501_v23 = vmul.f32 %v5104_v22, %v5104_v22  ;;  %v5469_v22 = vld [vmem:[%s6954_s2 + $0xa8] sm:$0xff]  }
 0x155   :  { %v1497_v7 = vmul.f32 %v1431_v5, %v1431_v5  ;;  %v5578_v15 = vpack.c.bf16 %v1496_v6, %v1493_v57  ;;  %v1478_v27 = vpop.f32.mrf.mxu1 }
 0x156   :  { %v1435_v11 = vpop.f32.mrf.mxu0  ;;  %v4781_v29 = vpack.c.bf16 %v1501_v23, %v1501_v23  ;;  %v1495_v30 = vmul.f32 %v1478_v27, %v1478_v27  ;;  %v5470_v27 = vld [vmem:[%s6954_s2 + $0xa0] sm:$0xff]  }
 0x157   :  { %v1499_v12 = vmul.f32 %v1435_v11, %v1435_v11  ;;  %v5577_v14 = vpack.c.bf16 %v1497_v7, %v1494_v61  ;;  %v5105_v32 = vpop.f32.mrf.mxu1 }
 0x158   :  { %v1437_v24 = vpop.f32.mrf.mxu0  ;;  %1550 = vst [vmem:[#allocation2 + $0xe0] sm:$0xf] %v4781_v29  ;;  %v4777_v34 = vpack.c.bf16 %v1495_v30, %v1495_v30  ;;  %v1504_v35 = vmul.f32 %v5105_v32, %v5105_v32 }
 0x159   :  { %v1500_v13 = vmul.f32 %v1437_v24, %v1437_v24  ;;  %3070 = vmatprep.mubr.bf16.mxu0 %v5577_v14  ;;  %v1481_v36 = vpop.f32.mrf.mxu1 }
 0x15a   :  { %v1439_v16 = vpop.f32.mrf.mxu0  ;;  %3071 = vmatmul.mubr.bf16.gmra.mxu0 %v5578_v15  ;;  %1546 = vst [vmem:[#allocation2 + $0xc8] sm:$0xf] %v4777_v34  ;;  %v4783_v37 = vpack.c.bf16 %v1504_v35, %v1504_v35  ;;  %v1498_v38 = vmul.f32 %v1481_v36, %v1481_v36 }
 0x15b   :  { %v1502_v17 = vmul.f32 %v1439_v16, %v1439_v16 }
 0x15c   :  { %v1441_v18 = vpop.f32.mrf.mxu0  ;;  %1552 = vst [vmem:[#allocation2 + $0xec] sm:$0xf] %v4783_v37  ;;  %v4779_v42 = vpack.c.bf16 %v1498_v38, %v1498_v38 }
 0x15d   :  { %v1503_v19 = vmul.f32 %v1441_v18, %v1441_v18  ;;  %v5580_v21 = vpack.c.bf16 %v1502_v17, %v1499_v12  ;;  %v5468_v18 = vld [vmem:[%s6954_s2 + $0xb0] sm:$0xff]  }
 0x15e   :  { %1548 = vst [vmem:[#allocation2 + $0xd4] sm:$0xf] %v4779_v42 }
 0x15f   :  { %v5579_v20 = vpack.c.bf16 %v1503_v19, %v1500_v13 }
 0x161   :  { %3078 = vmatprep.mubr.bf16.mxu0 %v5579_v20 }
 0x162   :  { %3079 = vmatmul.mubr.bf16.gmra.mxu0 %v5580_v21 }
 0x16a   :  { %v1728_v26 = vpop.f32.mrf.mxu0 }
 0x16b   :  { %v1796_v28 = vmul.f32 %v1728_v26, %v1728_v26 }
 0x16c   :  { %v1730_v31 = vpop.f32.mrf.mxu0 }
 0x16d   :  { %v1797_v33 = vmul.f32 %v1730_v31, %v1730_v31  ;;  %v5472_v31 = vld [vmem:[%s6954_s2 + $0x90] sm:$0xff]  }
 0x16e   :  { %v1732_v25 = vpop.f32.mrf.mxu0 }
 0x16f   :  { %v1799_v40 = vmul.f32 %v1732_v25, %v1732_v25 }
 0x170   :  { %v1734_v39 = vpop.f32.mrf.mxu0 }
 0x171   :  { %v1800_v41 = vmul.f32 %v1734_v39, %v1734_v39  ;;  %v5582_v8 = vpack.c.bf16 %v1799_v40, %v1796_v28 }
 0x172   :  { %v1738_v43 = vpop.f32.mrf.mxu0 }
 0x173   :  { %v1802_v44 = vmul.f32 %v1738_v43, %v1738_v43  ;;  %v5581_v47 = vpack.c.bf16 %v1800_v41, %v1797_v33  ;;  %v5473_v41 = vld [vmem:[%s6954_s2 + $0x88] sm:$0xff]  }
 0x174   :  { %v1740_v45 = vpop.f32.mrf.mxu0 }
 0x175   :  { %v1803_v46 = vmul.f32 %v1740_v45, %v1740_v45  ;;  %3086 = vmatprep.mubr.bf16.mxu0 %v5581_v47 }
 0x176   :  { %v1742_v48 = vpop.f32.mrf.mxu0  ;;  %3087 = vmatmul.mubr.bf16.gmra.mxu0 %v5582_v8 }
 0x177   :  { %v1805_v49 = vmul.f32 %v1742_v48, %v1742_v48 }
 0x178   :  { %v1744_v50 = vpop.f32.mrf.mxu0 }
 0x179   :  { %v1806_v51 = vmul.f32 %v1744_v50, %v1744_v50  ;;  %v5584_v53 = vpack.c.bf16 %v1805_v49, %v1802_v44  ;;  %v5475_v49 = vld [vmem:[%s6954_s2 + $0x80] sm:$0xff]  }
 0x17b   :  { %v5583_v52 = vpack.c.bf16 %v1806_v51, %v1803_v46 }
 0x17c   :  { %v5122_v54 = vpop.f32.mrf.mxu1 }
 0x17d   :  { %3094 = vmatprep.mubr.bf16.mxu0 %v5583_v52  ;;  %v1804_v55 = vmul.f32 %v5122_v54, %v5122_v54 }
 0x17e   :  { %3095 = vmatmul.mubr.bf16.gmra.mxu0 %v5584_v53  ;;  %v1781_v57 = vpop.f32.mrf.mxu1 }
 0x17f   :  { %v4789_v1 = vpack.c.bf16 %v1804_v55, %v1804_v55  ;;  %v1798_v59 = vmul.f32 %v1781_v57, %v1781_v57 }
 0x180   :  { %v5123_v61 = vpop.f32.mrf.mxu1 }
 0x181   :  { %1853 = vst [vmem:[#allocation2 + $0x110] sm:$0xf] %v4789_v1  ;;  %v4785_v63 = vpack.c.bf16 %v1798_v59, %v1798_v59  ;;  %v1807_v0 = vmul.f32 %v5123_v61, %v5123_v61 }
 0x182   :  { %v1784_v3 = vpop.f32.mrf.mxu1 }
 0x183   :  { %1849 = vst [vmem:[#allocation2 + $0xf8] sm:$0xf] %v4785_v63  ;;  %v4791_v4 = vpack.c.bf16 %v1807_v0, %v1807_v0  ;;  %v1801_v5 = vmul.f32 %v1784_v3, %v1784_v3  ;;  %v5476_v63 = vld [vmem:[#allocation2 + $0x20] ss:$12 sps:$4 sm:$0xff]  }
 0x185   :  { %1855 = vst [vmem:[#allocation2 + $0x11c] sm:$0xf] %v4791_v4  ;;  %v4787_v11 = vpack.c.bf16 %v1801_v5, %v1801_v5 }
 0x186   :  { %v2031_v56 = vpop.f32.mrf.mxu0 }
 0x187   :  { %v2099_v58 = vmul.f32 %v2031_v56, %v2031_v56  ;;  %1851 = vst [vmem:[#allocation2 + $0x104] sm:$0xf] %v4787_v11 }
 0x188   :  { %v2033_v60 = vpop.f32.mrf.mxu0 }
 0x189   :  { %v2100_v62 = vmul.f32 %v2033_v60, %v2033_v60  ;;  %v5474_v60 = vld [vmem:[#allocation2 + $0x8] ss:$12 sps:$4 sm:$0xff]  }
 0x18a   :  { %v2035_v2 = vpop.f32.mrf.mxu0 }
 0x18b   :  { %v2102_v7 = vmul.f32 %v2035_v2, %v2035_v2  ;;  %v5477_v2 = vld [vmem:[#allocation2 + $0x38] ss:$12 sps:$4 sm:$0xff]  }
 0x18c   :  { %v2037_v6 = vpop.f32.mrf.mxu0 }
 0x18d   :  { %v2103_v9 = vmul.f32 %v2037_v6, %v2037_v6  ;;  %v5585_v15 = vpack.c.bf16 %v2102_v7, %v2099_v58 }
 0x18e   :  { %v2041_v12 = vpop.f32.mrf.mxu0 }
 0x18f   :  { %v2105_v24 = vmul.f32 %v2041_v12, %v2041_v12  ;;  %v5586_v16 = vpack.c.bf16 %v2103_v9, %v2100_v62 }
 0x190   :  { %v2043_v13 = vpop.f32.mrf.mxu0 }
 0x191   :  { %v2106_v14 = vmul.f32 %v2043_v13, %v2043_v13  ;;  %3102 = vmatprep.mubr.bf16.mxu1 %v5586_v16  ;;  %v5478_v13 = vld [vmem:[#allocation2 + $0x50] ss:$12 sps:$4 sm:$0xff]   ;;  %v5481_v16 = vld [vmem:[#allocation2 + $0x98] ss:$12 sps:$4 sm:$0xff]  }
 0x192   :  { %v2045_v17 = vpop.f32.mrf.mxu0  ;;  %3103 = vmatmul.mubr.bf16.vlgmr.msra.gmra.mxu1 %v5585_v15  ;;  %v5480_v15 = vld [vmem:[#allocation2 + $0x80] ss:$12 sps:$4 sm:$0xff]  }
 0x193   :  { %v2108_v19 = vmul.f32 %v2045_v17, %v2045_v17  ;;  %5161 = vmatpush3.bf16.msra.mxu1 %v6353_v10  ;;  %v5471_v10 = vld [vmem:[%s6954_s2 + $0x98] sm:$0xff]  }
 0x194   :  { %v2047_v20 = vpop.f32.mrf.mxu0  ;;  %5162 = vmatprep.subr.bf16.mxu1 %v5468_v18  ;;  %v5482_v17 = vld [vmem:[#allocation2 + $0xb0] ss:$12 sps:$4 sm:$0xff]  }
 0x195   :  { %v2109_v21 = vmul.f32 %v2047_v20, %v2047_v20  ;;  %v5588_v26 = vpack.c.bf16 %v2108_v19, %v2105_v24  ;;  %v5485_v19 = vld [vmem:[#allocation2 + $0xf8] ss:$12 sps:$4 sm:$0xff]   ;;  %v5484_v20 = vld [vmem:[#allocation2 + $0xe0] ss:$12 sps:$4 sm:$0xff]  }
 0x197   :  { %v5587_v23 = vpack.c.bf16 %v2109_v21, %v2106_v14  ;;  %5163 = vmatpush3.bf16.msra.mxu1 %v5468_v18  ;;  %v5479_v14 = vld [vmem:[#allocation2 + $0x68] ss:$12 sps:$4 sm:$0xff]   ;;  %v5486_v21 = vld [vmem:[#allocation2 + $0x110] ss:$12 sps:$4 sm:$0xff]  }
 0x198   :  { %5164 = vmatprep.subr.bf16.mxu1 %v5469_v22  ;;  %v5140_v28 = vpop.f32.mrf.mxu1  ;;  %v5483_v18 = vld [vmem:[#allocation2 + $0xc8] ss:$12 sps:$4 sm:$0xff]  }
 0x199   :  { %3110 = vmatprep.mubr.bf16.mxu1 %v5587_v23  ;;  %v2107_v29 = vmul.f32 %v5140_v28, %v5140_v28 }
 0x19a   :  { %3111 = vmatmul.mubr.bf16.gmra.mxu1 %v5588_v26  ;;  %v2084_v32 = vpop.f32.mrf.mxu1 }
 0x19b   :  { %5165 = vmatpush3.bf16.msra.mxu1 %v5469_v22  ;;  %v4797_v33 = vpack.c.bf16 %v2107_v29, %v2107_v29  ;;  %v2101_v34 = vmul.f32 %v2084_v32, %v2084_v32 }
 0x19c   :  { %5166 = vmatprep.subr.bf16.mxu1 %v5470_v27  ;;  %v5141_v25 = vpop.f32.mrf.mxu1 }
 0x19d   :  { %2156 = vst [vmem:[#allocation2 + $0x140] sm:$0xf] %v4797_v33  ;;  %v4793_v38 = vpack.c.bf16 %v2101_v34, %v2101_v34  ;;  %v2110_v39 = vmul.f32 %v5141_v25, %v5141_v25 }
 0x19e   :  { %v2087_v42 = vpop.f32.mrf.mxu1 }
 0x19f   :  { %5167 = vmatpush3.bf16.msra.mxu1 %v5470_v27  ;;  %2152 = vst [vmem:[#allocation2 + $0x128] sm:$0xf] %v4793_v38  ;;  %v4799_v43 = vpack.c.bf16 %v2110_v39, %v2110_v39  ;;  %v2104_v44 = vmul.f32 %v2087_v42, %v2087_v42 }
 0x1a0   :  { %5168 = vmatprep.subr.bf16.mxu1 %v5471_v10 }
 0x1a1   :  { %2158 = vst [vmem:[#allocation2 + $0x14c] sm:$0xf] %v4799_v43  ;;  %v4795_v8 = vpack.c.bf16 %v2104_v44, %v2104_v44 }
 0x1a2   :  { %v2334_v30 = vpop.f32.mrf.mxu0 }
 0x1a3   :  { %v2402_v36 = vmul.f32 %v2334_v30, %v2334_v30  ;;  %5169 = vmatpush3.bf16.msra.mxu1 %v5471_v10  ;;  %2154 = vst [vmem:[#allocation2 + $0x134] sm:$0xf] %v4795_v8 }
 0x1a4   :  { %v2336_v35 = vpop.f32.mrf.mxu0  ;;  %5170 = vmatprep.subr.bf16.mxu1 %v5472_v31 }
 0x1a5   :  { %v2403_v37 = vmul.f32 %v2336_v35, %v2336_v35 }
 0x1a6   :  { %v2338_v40 = vpop.f32.mrf.mxu0 }
 0x1a7   :  { %v2405_v46 = vmul.f32 %v2338_v40, %v2338_v40  ;;  %5171 = vmatpush3.bf16.msra.mxu1 %v5472_v31 }
 0x1a8   :  { %v2340_v45 = vpop.f32.mrf.mxu0  ;;  %5172 = vmatprep.subr.bf16.mxu1 %v5473_v41  ;;  %v5488_v23 = vld [vmem:[#allocation2 + $0x140] ss:$12 sps:$4 sm:$0xff]  }
 0x1a9   :  { %v2406_v47 = vmul.f32 %v2340_v45, %v2340_v45  ;;  %v5590_v54 = vpack.c.bf16 %v2405_v46, %v2402_v36 }
 0x1aa   :  { %v2344_v48 = vpop.f32.mrf.mxu0  ;;  %v5487_v22 = vld [vmem:[#allocation2 + $0x128] ss:$12 sps:$4 sm:$0xff]  }
 0x1ab   :  { %v2408_v51 = vmul.f32 %v2344_v48, %v2344_v48  ;;  %v5589_v53 = vpack.c.bf16 %v2406_v47, %v2403_v37  ;;  %5173 = vmatpush3.bf16.msra.mxu1 %v5473_v41 }
 0x1ac   :  { %v2346_v50 = vpop.f32.mrf.mxu0  ;;  %5174 = vmatprep.subr.bf16.mxu1 %v5475_v49 }
 0x1ad   :  { %v2409_v52 = vmul.f32 %v2346_v50, %v2346_v50  ;;  %3118 = vmatprep.mubr.bf16.mxu1 %v5589_v53 }
 0x1ae   :  { %v2348_v55 = vpop.f32.mrf.mxu0  ;;  %3119 = vmatmul.mubr.bf16.gmra.mxu1 %v5590_v54 }
 0x1af   :  { %v2411_v57 = vmul.f32 %v2348_v55, %v2348_v55  ;;  %5175 = vmatpush3.bf16.msra.mxu1 %v5475_v49 }
 0x1b0   :  { %v2350_v56 = vpop.f32.mrf.mxu0 }
 0x1b1   :  { %v2412_v58 = vmul.f32 %v2350_v56, %v2350_v56  ;;  %v5592_v59 = vpack.c.bf16 %v2411_v57, %v2408_v51 }
 0x1b3   :  { %v5591_v1 = vpack.c.bf16 %v2412_v58, %v2409_v52 }
 0x1b4   :  { %v5158_v61 = vpop.f32.mrf.mxu1 }
 0x1b5   :  { %3126 = vmatprep.mubr.bf16.mxu1 %v5591_v1  ;;  %v2410_v62 = vmul.f32 %v5158_v61, %v5158_v61 }
 0x1b6   :  { %3127 = vmatmul.mubr.bf16.gmra.mxu1 %v5592_v59  ;;  %v2387_v0 = vpop.f32.mrf.mxu1 }
 0x1b7   :  { %5176 = vmatprep.mubr.bf16.mxu1 %v5474_v60  ;;  %v4805_v3 = vpack.c.bf16 %v2410_v62, %v2410_v62  ;;  %v2404_v4 = vmul.f32 %v2387_v0, %v2387_v0 }
 0x1b8   :  { %v5159_v5 = vpop.f32.mrf.mxu1 }
 0x1b9   :  { %2459 = vst [vmem:[#allocation2 + $0x170] sm:$0xf] %v4805_v3  ;;  %v4801_v6 = vpack.c.bf16 %v2404_v4, %v2404_v4  ;;  %v2413_v7 = vmul.f32 %v5159_v5, %v5159_v5 }
 0x1ba   :  { %v2390_v9 = vpop.f32.mrf.mxu1 }
 0x1bb   :  { %2455 = vst [vmem:[#allocation2 + $0x158] sm:$0xf] %v4801_v6  ;;  %v4807_v11 = vpack.c.bf16 %v2413_v7, %v2413_v7  ;;  %v2407_v12 = vmul.f32 %v2390_v9, %v2390_v9 }
 0x1bd   :  { %2461 = vst [vmem:[#allocation2 + $0x17c] sm:$0xf] %v4807_v11  ;;  %v4803_v24 = vpack.c.bf16 %v2407_v12, %v2407_v12 }
 0x1be   :  { %5177 = vmatmul.mubr.bf16.vlgmr.msra.gmra.mxu1 %v5476_v63 }
 0x1bf   :  { %5180 = vmatprep.mubr.bf16.mxu1 %v5477_v2  ;;  %2457 = vst [vmem:[#allocation2 + $0x164] sm:$0xf] %v4803_v24 }
 0x1c2   :  { %v4896_v10 = vpop.f32.mrf.mxu0 }
 0x1c4   :  { %v5490_v27 = vld [vmem:[#allocation2 + $0x170] ss:$12 sps:$4 sm:$0xff]   ;;  %v4897_v28 = vpop.f32.mrf.mxu0 }
 0x1c6   :  { %5181 = vmatmul.mubr.bf16.gmra.mxu1 %v5478_v13  ;;  %v5489_v26 = vld [vmem:[#allocation2 + $0x158] ss:$12 sps:$4 sm:$0xff]   ;;  %v4899_v29 = vpop.f32.mrf.mxu0 }
 0x1c7   :  { %5184 = vmatprep.mubr.bf16.mxu1 %v5479_v14 }
 0x1c8   :  { %v4900_v30 = vpop.f32.mrf.mxu0 }
 0x1ca   :  { %v4902_v31 = vpop.f32.mrf.mxu0 }
 0x1cc   :  { %v4903_v32 = vpop.f32.mrf.mxu0 }
 0x1cd   :  { %v4904_v13 = vadd.f32 %v4903_v32, %v4902_v31 }
 0x1ce   :  { %5185 = vmatmul.mubr.bf16.gmra.mxu1 %v5480_v15  ;;  %v4905_v33 = vpop.f32.mrf.mxu0 }
 0x1cf   :  { %5188 = vmatprep.mubr.bf16.mxu1 %v5481_v16  ;;  %v4898_v16 = vadd.f32 %v4897_v28, %v4896_v10 }
 0x1d0   :  { %v4906_v34 = vpop.f32.mrf.mxu0 }
 0x1d2   :  { %v6378_v35 = vpop.f32.mrf.mxu0 }
 0x1d4   :  { %v6380_v25 = vpop.f32.mrf.mxu0 }
 0x1d6   :  { %5189 = vmatmul.mubr.bf16.gmra.mxu1 %v5482_v17  ;;  %v6382_v36 = vpop.f32.mrf.mxu0 }
 0x1d7   :  { %5192 = vmatprep.mubr.bf16.mxu1 %v5483_v18 }
 0x1d8   :  { %v6384_v37 = vpop.f32.mrf.mxu0 }
 0x1da   :  { %v4914_v38 = vpop.f32.mrf.mxu0 }
 0x1dc   :  { %v4915_v39 = vpop.f32.mrf.mxu0 }
 0x1dd   :  { %v4916_v32 = vadd.f32 %v4915_v39, %v4914_v38 }
 0x1de   :  { %5193 = vmatmul.mubr.bf16.gmra.mxu1 %v5484_v20  ;;  %v6386_v40 = vpop.f32.mrf.mxu0  ;;  %v4907_v20 = vadd.f32 %v4906_v34, %v4905_v33 }
 0x1df   :  { %5196 = vmatprep.mubr.bf16.mxu1 %v5485_v19 }
 0x1e0   :  { %v6388_v41 = vpop.f32.mrf.mxu0 }
 0x1e2   :  { %v6390_v42 = vpop.f32.mrf.mxu0 }
 0x1e4   :  { %v6392_v45 = vpop.f32.mrf.mxu0 }
 0x1e6   :  { %5197 = vmatmul.mubr.bf16.gmra.mxu1 %v5486_v21  ;;  %v6396_v48 = vpop.f32.mrf.mxu0 }
 0x1e7   :  { %5200 = vmatprep.mubr.bf16.mxu1 %v5487_v22 }
 0x1e8   :  { %v6400_v52 = vpop.f32.mrf.mxu0 }
 0x1ea   :  { %v6404_v56 = vpop.f32.mrf.mxu0 }
 0x1ec   :  { %v6408_v58 = vpop.f32.mrf.mxu0 }
 0x1ee   :  { %5201 = vmatmul.mubr.bf16.gmra.mxu1 %v5488_v23  ;;  %v6410_v1 = vpop.f32.mrf.mxu0 }
 0x1ef   :  { %5204 = vmatprep.mubr.bf16.mxu1 %v5489_v26  ;;  %v4901_v26 = vadd.f32 %v4900_v30, %v4899_v29 }
 0x1f0   :  { %v6412_v59 = vpop.f32.mrf.mxu0 }
 0x1f6   :  { %5205 = vmatmul.mubr.bf16.gmra.mxu1 %v5490_v27 }
 0x1fe   :  { %v6414_v61 = vpop.f32.mrf.mxu0 }
 0x200   :  { %v6418_v2 = vpop.f32.mrf.mxu0 }
 0x202   :  { %v6422_v6 = vpop.f32.mrf.mxu0 }
 0x204   :  { %v6426_v12 = vpop.f32.mrf.mxu0 }
 0x206   :  { %v6430_v17 = vpop.f32.mrf.mxu0 }
 0x208   :  { %v6434_v27 = vpop.f32.mrf.mxu0 }
 0x20a   :  { %v6442_v34 = vpop.f32.mrf.mxu0 }
 0x252   :  { %v4968_v43 = vpop.f32.mrf.mxu1 }
 0x254   :  { %v4969_v44 = vpop.f32.mrf.mxu1 }
 0x255   :  { %v6394_v46 = vadd.f32 %v4969_v44, %v4968_v43 }
 0x256   :  { %v4971_v47 = vpop.f32.mrf.mxu1 }
 0x258   :  { %v4972_v8 = vpop.f32.mrf.mxu1 }
 0x259   :  { %v6398_v49 = vadd.f32 %v4972_v8, %v4971_v47  ;;  %v4910_v8 = vadd.f32 %v6380_v25, %v6378_v35 }
 0x25a   :  { %v4974_v50 = vpop.f32.mrf.mxu1 }
 0x25c   :  { %v4975_v51 = vpop.f32.mrf.mxu1 }
 0x25d   :  { %v6402_v53 = vadd.f32 %v4975_v51, %v4974_v50  ;;  %v6450_v51 = vpop.f32.mrf.mxu0 }
 0x25e   :  { %v4977_v54 = vpop.f32.mrf.mxu1 }
 0x260   :  { %v4978_v55 = vpop.f32.mrf.mxu1 }
 0x261   :  { %v6406_v57 = vadd.f32 %v4978_v55, %v4977_v54 }
 0x26e   :  { %v4980_v60 = vpop.f32.mrf.mxu1 }
 0x270   :  { %v4981_v62 = vpop.f32.mrf.mxu1 }
 0x271   :  { %v6416_v63 = vadd.f32 %v4981_v62, %v4980_v60  ;;  %v4919_v60 = vadd.f32 %v6388_v41, %v6386_v40  ;;  %v6456_v62 = vpop.f32.mrf.mxu0 }
 0x272   :  { %v4983_v0 = vpop.f32.mrf.mxu1 }
 0x274   :  { %v4984_v3 = vpop.f32.mrf.mxu1 }
 0x275   :  { %v6420_v4 = vadd.f32 %v4984_v3, %v4983_v0 }
 0x276   :  { %v4986_v5 = vpop.f32.mrf.mxu1 }
 0x278   :  { %v4987_v7 = vpop.f32.mrf.mxu1 }
 0x279   :  { %v6424_v9 = vadd.f32 %v4987_v7, %v4986_v5 }
 0x27a   :  { %v4989_v11 = vpop.f32.mrf.mxu1 }
 0x27c   :  { %v4990_v24 = vpop.f32.mrf.mxu1 }
 0x27d   :  { %v6428_v14 = vadd.f32 %v4990_v24, %v4989_v11  ;;  %v4913_v11 = vadd.f32 %v6384_v37, %v6382_v36  ;;  %v6474_v36 = vld [vmem:[%s6955_s3 + $0x10] sm:$0xff] }
 0x27e   :  { %v5178_v15 = vpop.f32.mrf.mxu1 }
 0x27f   :  { %v3178_v18 = vadd.f32 %v5178_v15, %v4904_v13  ;;  %v6465_v15 = vpop.f32.mrf.mxu0 }
 0x280   :  { %v3169_v19 = vpop.f32.mrf.mxu1 }
 0x281   :  { %v3314_v21 = vadd.f32 1.0, %v3178_v18  ;;  %v6432_v22 = vadd.f32 %v4898_v16, %v3169_v19  ;;  %v3317_v50 = vmul.f32 -0.5, %v3178_v18  ;;  %v3320_v5 = vand.u32 2147483647, %v3178_v18 }
 0x282   :  { %v5179_v23 = vpop.f32.mrf.mxu1 }
 0x283   :  { %v3296_v43 = vadd.f32 1.0, %v6432_v22  ;;  %v6437_v44 = vadd.f32 %v5179_v23, %v4907_v20  ;;  %5491 = vlog2.f32 %v3314_v21  ;;  %v3318_v3 = vadd.f32 1.0, %v3317_v50 }
 0x284   :  { %v3172_v31 = vpop.f32.mrf.mxu1  ;;  %v3299_v24 = vmul.f32 -0.5, %v6432_v22  ;;  %vm3321_vm1 = vcmp.lt.f32.partialorder %v3320_v5, 0.0004427343 }
 0x285   :  { %v3323_v10 = vadd.f32 1.0, %v6437_v44  ;;  %v6440_v28 = vadd.f32 %v4901_v26, %v3172_v31  ;;  %5493 = vlog2.f32 %v3296_v43  ;;  %v3326_v0 = vmul.f32 -0.5, %v6437_v44 }
 0x286   :  { %v5182_v33 = vpop.f32.mrf.mxu1  ;;  %v3319_v20 = vmul.f32 %v3318_v3, %v3178_v18  ;;  %v3329_v37 = vand.u32 2147483647, %v6437_v44  ;;  %v4928_v43 = vadd.f32 %v6408_v58, %v6404_v56  ;;  %v3302_v18 = vand.u32 2147483647, %v6432_v22 }
 0x287   :  { %v3305_v47 = vadd.f32 1.0, %v6440_v28  ;;  %v6445_v29 = vadd.f32 %v5182_v33, %v4916_v32  ;;  %5495 = vlog2.f32 %v3323_v10  ;;  %v3308_v40 = vmul.f32 -0.5, %v6440_v28  ;;  %v6480_v33 = vpop.f32.mrf.mxu0 }
 0x288   :  { %v3185_v30 = vpop.f32.mrf.mxu1  ;;  %v3327_v41 = vadd.f32 1.0, %v3326_v0  ;;  %v3300_v10 = vadd.f32 1.0, %v3299_v24  ;;  %vm3330_vm2 = vcmp.lt.f32.partialorder %v3329_v37, 0.0004427343  ;;  %v6499_v0 = vld [vmem:[%s6955_s3 + $0x30] sm:$0xff]  ;;  %v6524_v37 = vld [vmem:[%s6955_s3] sm:$0xff] }
 0x289   :  { %5497 = vlog2.f32 %v3305_v47  ;;  %v3350_v38 = vadd.f32 1.0, %v6445_v29  ;;  %v6452_v54 = vadd.f32 %v4910_v8, %v3185_v30  ;;  %v3353_v47 = vmul.f32 -0.5, %v6445_v29 }
 0x28a   :  { %v5183_v39 = vpop.f32.mrf.mxu1  ;;  %v3328_v30 = vmul.f32 %v3327_v41, %v6437_v44  ;;  %v3309_v8 = vadd.f32 1.0, %v3308_v40  ;;  %v6494_v44 = vld [vmem:[%s6955_s3 + $0x38] sm:$0xff]  ;;  %vm3303_vm3 = vcmp.lt.f32.partialorder %v3302_v18, 0.0004427343  ;;  %v3356_v40 = vand.u32 2147483647, %v6445_v29 }
 0x28b   :  { %5499 = vlog2.f32 %v3350_v38  ;;  %v3332_v35 = vadd.f32 1.0, %v6452_v54  ;;  %v6460_v25 = vadd.f32 %v5183_v39, %v4919_v60  ;;  %v3311_v38 = vand.u32 2147483647, %v6440_v28 }
 0x28c   :  { %v3188_v55 = vpop.f32.mrf.mxu1  ;;  %v4922_v60 = vadd.f32 %v6392_v45, %v6390_v42  ;;  %v3301_v42 = vmul.f32 %v3300_v10, %v6432_v22  ;;  %v6504_v45 = vpop.f32.mrf.mxu0  ;;  %v3310_v24 = vmul.f32 %v3309_v8, %v6440_v28  ;;  %v6519_v28 = vld [vmem:[%s6955_s3 + $0x28] sm:$0xff]  ;;  %v3335_v10 = vmul.f32 -0.5, %v6452_v54 }
 0x28d   :  { %v6468_v16 = vadd.f32 %v4913_v11, %v3188_v55  ;;  %5501 = vlog2.f32 %v3332_v35  ;;  %v3359_v23 = vadd.f32 1.0, %v6460_v25  ;;  %vm3312_vm4 = vcmp.lt.f32.partialorder %v3311_v38, 0.0004427343 }
 0x28e   :  { %v5186_v13 = vpop.f32.mrf.mxu1  ;;  %vm3357_vm5 = vcmp.lt.f32.partialorder %v3356_v40, 0.0004427343  ;;  %v4934_v40 = vadd.f32 %v6418_v2, %v6414_v61  ;;  %v3365_v2 = vand.u32 2147483647, %v6460_v25 }
 0x28f   :  { %v3341_v50 = vadd.f32 1.0, %v6468_v16  ;;  %v6486_v55 = vadd.f32 %v5186_v13, %v4928_v43  ;;  %5503 = vlog2.f32 %v3359_v23  ;;  %v3354_v13 = vadd.f32 1.0, %v3353_v47 }
 0x290   :  { %v5492_v7 = vpop.eup %5491  ;;  %v3201_v31 = vpop.f32.mrf.mxu1  ;;  %vm3366_vm7 = vcmp.lt.f32.partialorder %v3365_v2, 0.0004427343 }
 0x291   :  { %v3316_v19 = vmul.f32 0.6931472, %v5492_v7  ;;  %5505 = vlog2.f32 %v3341_v50  ;;  %v3386_v41 = vadd.f32 1.0, %v6486_v55  ;;  %v3355_v18 = vmul.f32 %v3354_v13, %v6445_v29 }
 0x292   :  { %v5494_v21 = vpop.eup %5493  ;;  %v5187_v5 = vpop.f32.mrf.mxu1  ;;  %v4931_v29 = vadd.f32 %v6412_v59, %v6410_v1  ;;  %v6557_v1 = vld [vmem:[%s6955_s3 + $0x18] sm:$0xff] }
 0x293   :  { %v3322_v32 = vsel %vm3321_vm1, %v3319_v20, %v3316_v19  ;;  %v3298_v3 = vmul.f32 0.6931472, %v5494_v21  ;;  %v6512_v21 = vadd.f32 %v4922_v60, %v3201_v31  ;;  %v4925_v31 = vadd.f32 %v6400_v52, %v6396_v48  ;;  %v6541_v48 = vld [vmem:[%s6955_s3 + $0x20] sm:$0xff] }
 0x294   :  { %v5496_v26 = vpop.eup %5495  ;;  %v3594_v56 = vmul.f32 %v6474_v36, %v3322_v32  ;;  %v3901_v20 = vmul.f32 %v6499_v0, %v3322_v32  ;;  %v3204_v43 = vpop.f32.mrf.mxu1  ;;  %5507 = vlog2.f32 %v3386_v41  ;;  %v3336_v60 = vadd.f32 1.0, %v3335_v10 }
 0x295   :  { %v3325_v58 = vmul.f32 0.6931472, %v5496_v26  ;;  %v3304_v23 = vsel %vm3303_vm3, %v3301_v42, %v3298_v3  ;;  %v6528_v32 = vpop.f32.mrf.mxu0  ;;  %v3368_v8 = vadd.f32 1.0, %v6512_v21  ;;  %v6536_v38 = vadd.f32 %v4925_v31, %v3204_v43 }
 0x296   :  { %v5498_v39 = vpop.eup %5497  ;;  %3628 = vadd.xlane.f32.xlu0 %v3594_v56  ;;  %v5190_v50 = vpop.f32.mrf.mxu1  ;;  %v3338_v3 = vand.u32 2147483647, %v6452_v54  ;;  %v3899_v42 = vmul.f32 %v6541_v48, %v3304_v23 }
 0x297   :  { %v6501_v7 = vsel %vm3330_vm2, %v3328_v30, %v3325_v58  ;;  %v3307_v11 = vmul.f32 0.6931472, %v5498_v39  ;;  %v3592_v30 = vmul.f32 %v6524_v37, %v3304_v23  ;;  %v6545_v56 = vpop.f32.mrf.mxu0  ;;  %v3362_v58 = vmul.f32 -0.5, %v6460_v25 }
 0x298   :  { %v5500_v35 = vpop.eup %5499  ;;  %v3902_v19 = vmul.f32 %v6494_v44, %v6501_v7  ;;  %5509 = vlog2.f32 %v3368_v8  ;;  %v3217_v41 = vpop.f32.mrf.mxu1  ;;  %v3337_v23 = vmul.f32 %v3336_v60, %v6452_v54  ;;  %vm3339_vm6 = vcmp.lt.f32.partialorder %v3338_v3, 0.0004427343  ;;  %v6577_v54 = vld [vmem:[%s6955_s3 + $0x8] sm:$0xff] }
 0x299   :  { %v6514_v22 = vsel %vm3312_vm4, %v3310_v24, %v3307_v11  ;;  %v3352_v26 = vmul.f32 0.6931472, %v5500_v35  ;;  %v6549_v35 = vadd.f32 %v5187_v5, %v4931_v29  ;;  %v3377_v24 = vadd.f32 1.0, %v6536_v38 }
 0x29a   :  { %3937 = vadd.xlane.f32.xlu1 %v3902_v19  ;;  %3935 = vadd.xlane.f32.xlu0 %v3901_v20  ;;  %v3900_v47 = vmul.f32 %v6519_v28, %v6514_v22  ;;  %v5502_v52 = vpop.eup %5501  ;;  %v4940_v5 = vadd.f32 %v6434_v27, %v6430_v17  ;;  %v6563_v19 = vpop.f32.mrf.mxu0  ;;  %v3344_v20 = vmul.f32 -0.5, %v6468_v16  ;;  %v3595_v61 = vmul.f32 %v6557_v1, %v6501_v7 }
 0x29b   :  { %v3358_v39 = vsel %vm3357_vm5, %v3355_v18, %v3352_v26  ;;  %v3334_v59 = vmul.f32 0.6931472, %v5502_v52  ;;  %v3363_v26 = vadd.f32 1.0, %v3362_v58  ;;  %v3395_v43 = vadd.f32 1.0, %v6549_v35 }
 0x29c   :  { %v3598_v11 = vmul.f32 %v6474_v36, %v3358_v39  ;;  %v5504_v13 = vpop.eup %5503  ;;  %v3905_v31 = vmul.f32 %v6499_v0, %v3358_v39  ;;  %5511 = vlog2.f32 %v3377_v24  ;;  %v6572_v27 = vadd.f32 %v5190_v50, %v4940_v5 }
 0x29d   :  { %v3340_v10 = vsel %vm3339_vm6, %v3337_v23, %v3334_v59  ;;  %v3361_v18 = vmul.f32 0.6931472, %v5504_v13  ;;  %v3389_v7 = vmul.f32 -0.5, %v6486_v55  ;;  %v6582_v8 = vadd.f32 %v4934_v40, %v3217_v41 }
 0x29e   :  { %3933 = vadd.xlane.f32.xlu1 %v3900_v47  ;;  %3624 = vadd.xlane.f32.xlu0 %v3592_v30  ;;  %v5506_v17 = vpop.eup %5505  ;;  %v5191_v47 = vpop.f32.mrf.mxu1  ;;  %v3364_v39 = vmul.f32 %v3363_v26, %v6460_v25  ;;  %v3345_v52 = vadd.f32 1.0, %v3344_v20  ;;  %v3596_v29 = vmul.f32 %v6524_v37, %v3340_v10  ;;  %v3593_v50 = vmul.f32 %v6577_v54, %v6514_v22 }
 0x29f   :  { %v6579_v30 = vpop.f32.mrf.mxu0  ;;  %v3347_v58 = vand.u32 2147483647, %v6468_v16  ;;  %5513 = vlog2.f32 %v3395_v43  ;;  %v3422_v3 = vadd.f32 1.0, %v6572_v27  ;;  %v4943_v25 = vadd.f32 %v6450_v51, %v6442_v34 }
 0x2a0   :  { %v3220_v59 = vpop.f32.mrf.mxu1  ;;  %v3371_v13 = vmul.f32 -0.5, %v6512_v21  ;;  %v3404_v22 = vadd.f32 1.0, %v6582_v8  ;;  %v3346_v40 = vmul.f32 %v3345_v52, %v6468_v16  ;;  %v3390_v5 = vadd.f32 1.0, %v3389_v7 }
 0x2a1   :  { %v6589_v60 = vpop.f32.mrf.mxu0  ;;  %v5508_v24 = vpop.eup %5507  ;;  %v3903_v20 = vmul.f32 %v6541_v48, %v3340_v10  ;;  %vm3348_vm8 = vcmp.lt.f32.partialorder %v3347_v58, 0.0004427343  ;;  %v3392_v23 = vand.u32 2147483647, %v6486_v55  ;;  %5515 = vlog2.f32 %v3422_v3 }
 0x2a2   :  { %3636 = vadd.xlane.f32.xlu1 %v3598_v11  ;;  %3931 = vadd.xlane.f32.xlu0 %v3899_v42  ;;  %v3367_v11 = vsel %vm3366_vm7, %v3364_v39, %v3361_v18  ;;  %v3343_v42 = vmul.f32 0.6931472, %v5506_v17  ;;  %v6602_v34 = vadd.f32 %v5191_v47, %v4943_v25  ;;  %v3388_v43 = vmul.f32 0.6931472, %v5508_v24  ;;  %v5194_v2 = vpop.f32.mrf.mxu1 }
 0x2a3   :  { %v3599_v41 = vmul.f32 %v6557_v1, %v3367_v11  ;;  %v6600_v26 = vpop.f32.mrf.mxu0  ;;  %v4952_v16 = vadd.f32 %v6545_v56, %v6528_v32  ;;  %v3380_v17 = vmul.f32 -0.5, %v6536_v38  ;;  %5517 = vlog2.f32 %v3404_v22 }
 0x2a4   :  { %v3349_v51 = vsel %vm3348_vm8, %v3346_v40, %v3343_v42  ;;  %v3391_v10 = vmul.f32 %v3390_v5, %v6486_v55  ;;  %v3372_v18 = vadd.f32 1.0, %v3371_v13  ;;  %v3906_v7 = vmul.f32 %v6494_v44, %v3367_v11 }
 0x2a5   :  { %v3597_v47 = vmul.f32 %v6577_v54, %v3349_v51  ;;  %vm3393_vm9 = vcmp.lt.f32.partialorder %v3392_v23, 0.0004427343  ;;  %v3374_v39 = vand.u32 2147483647, %v6512_v21  ;;  %v3398_v55 = vmul.f32 -0.5, %v6549_v35 }
 0x2a6   :  { %3943 = vadd.xlane.f32.xlu1 %v3905_v31  ;;  %3630 = vadd.xlane.f32.xlu0 %v3595_v61  ;;  %v5510_v31 = vpop.eup %5509  ;;  %v4937_v61 = vadd.f32 %v6426_v12, %v6422_v6  ;;  %v6613_v6 = vpop.f32.mrf.mxu0  ;;  %v3431_v12 = vadd.f32 1.0, %v6602_v34  ;;  %v3394_v56 = vsel %vm3393_vm9, %v3391_v10, %v3388_v43  ;;  %v6619_v58 = vadd.f32 %v5194_v2, %v4952_v16 }
 0x2a7   :  { %v3370_v52 = vmul.f32 0.6931472, %v5510_v31  ;;  %v3373_v3 = vmul.f32 %v3372_v18, %v6512_v21  ;;  %v3381_v11 = vadd.f32 1.0, %v3380_v17  ;;  %v3904_v42 = vmul.f32 %v6519_v28, %v3349_v51 }
 0x2a8   :  { %v6616_v32 = vadd.f32 %v4937_v61, %v3220_v59  ;;  %v3602_v24 = vmul.f32 %v6474_v36, %v3394_v56  ;;  %vm3375_vm10 = vcmp.lt.f32.partialorder %v3374_v39, 0.0004427343  ;;  %v3383_v25 = vand.u32 2147483647, %v6536_v38  ;;  %v6625_v59 = vpop.f32.mrf.mxu0 }
 0x2a9   :  { %5519 = vlog2.f32 %v3431_v12  ;;  %v3376_v22 = vsel %vm3375_vm10, %v3373_v3, %v3370_v52  ;;  %v3458_v23 = vadd.f32 1.0, %v6619_v58  ;;  %v3382_v51 = vmul.f32 %v3381_v11, %v6536_v38 }
 0x2aa   :  { %3632 = vadd.xlane.f32.xlu1 %v3596_v29  ;;  %3626 = vadd.xlane.f32.xlu0 %v3593_v50  ;;  %v5512_v29 = vpop.eup %5511  ;;  %v3233_v50 = vpop.f32.mrf.mxu1  ;;  %v3413_v13 = vadd.f32 1.0, %v6616_v32  ;;  %v3399_v43 = vadd.f32 1.0, %v3398_v55  ;;  %v3909_v31 = vmul.f32 %v6499_v0, %v3394_v56  ;;  %v3600_v61 = vmul.f32 %v6524_v37, %v3376_v22 }
 0x2ab   :  { %v3379_v40 = vmul.f32 0.6931472, %v5512_v29  ;;  %vm3384_vm11 = vcmp.lt.f32.partialorder %v3383_v25, 0.0004427343  ;;  %v3401_v16 = vand.u32 2147483647, %v6549_v35  ;;  %v4962_v2 = vpop.f32.mrf.mxu0  ;;  %v4949_v18 = vadd.f32 %v6504_v45, %v6480_v33 }
 0x2ac   :  { %v5514_v5 = vpop.eup %5513  ;;  %v5195_v21 = vpop.f32.mrf.mxu1  ;;  %5521 = vlog2.f32 %v3413_v13  ;;  %v4955_v38 = vadd.f32 %v6579_v30, %v6563_v19  ;;  %v3400_v39 = vmul.f32 %v3399_v43, %v6549_v35  ;;  %v3907_v29 = vmul.f32 %v6541_v48, %v3376_v22 }
 0x2ad   :  { %v3397_v17 = vmul.f32 0.6931472, %v5514_v5  ;;  %5523 = vlog2.f32 %v3458_v23  ;;  %vm3402_vm12 = vcmp.lt.f32.partialorder %v3401_v16, 0.0004427343  ;;  %v3428_v33 = vand.u32 2147483647, %v6572_v27  ;;  %v4963_v45 = vpop.f32.mrf.mxu0 }
 0x2ae   :  { %3638 = vadd.xlane.f32.xlu1 %v3599_v41  ;;  %3939 = vadd.xlane.f32.xlu0 %v3903_v20  ;;  %v4946_v41 = vadd.f32 %v6465_v15, %v6456_v62  ;;  %v3425_v20 = vmul.f32 -0.5, %v6572_v27  ;;  %v3385_v15 = vsel %vm3384_vm11, %v3382_v51, %v3379_v40  ;;  %v5516_v10 = vpop.eup %5515  ;;  %v4964_v3 = vadd.f32 %v4963_v45, %v4962_v2 }
 0x2af   :  { %v3601_v52 = vmul.f32 %v6577_v54, %v3385_v15  ;;  %v3424_v55 = vmul.f32 0.6931472, %v5516_v10  ;;  %v3434_v35 = vmul.f32 -0.5, %v6602_v34  ;;  %v3908_v13 = vmul.f32 %v6519_v28, %v3385_v15 }
 0x2b0   :  { %v6636_v62 = vadd.f32 %v4946_v41, %v3233_v50  ;;  %v3426_v12 = vadd.f32 1.0, %v3425_v20  ;;  %v5518_v56 = vpop.eup %5517  ;;  %v3403_v50 = vsel %vm3402_vm12, %v3400_v39, %v3397_v17  ;;  %vm3429_vm13 = vcmp.lt.f32.partialorder %v3428_v33, 0.0004427343 }
 0x2b1   :  { %v3603_v22 = vmul.f32 %v6557_v1, %v3403_v50  ;;  %v3410_v40 = vand.u32 2147483647, %v6582_v8  ;;  %v3406_v20 = vmul.f32 0.6931472, %v5518_v56  ;;  %v3910_v2 = vmul.f32 %v6494_v44, %v3403_v50 }
 0x2b2   :  { %3634 = vadd.xlane.f32.xlu1 %v3597_v47  ;;  %3945 = vadd.xlane.f32.xlu0 %v3906_v7  ;;  %v3236_v47 = vpop.f32.mrf.mxu1  ;;  %v3407_v7 = vmul.f32 -0.5, %v6582_v8  ;;  %v3440_v19 = vadd.f32 1.0, %v6636_v62  ;;  %v3437_v15 = vand.u32 2147483647, %v6602_v34  ;;  %v3461_v39 = vmul.f32 -0.5, %v6619_v58 }
 0x2b3   :  { %v6648_v30 = vadd.f32 %v4949_v18, %v3236_v47  ;;  %vm3411_vm14 = vcmp.lt.f32.partialorder %v3410_v40, 0.0004427343  ;;  %v4958_v47 = vadd.f32 %v6600_v26, %v6589_v60 }
 0x2b4   :  { %v5198_v11 = vpop.f32.mrf.mxu1  ;;  %v3408_v25 = vadd.f32 1.0, %v3407_v7  ;;  %5525 = vlog2.f32 %v3440_v19  ;;  %vm3438_vm15 = vcmp.lt.f32.partialorder %v3437_v15, 0.0004427343  ;;  %v3419_v19 = vand.u32 2147483647, %v6616_v32 }
 0x2b5   :  { %v3449_v5 = vadd.f32 1.0, %v6648_v30  ;;  %v6659_v43 = vadd.f32 %v5198_v11, %v4964_v3 }
 0x2b6   :  { %3941 = vadd.xlane.f32.xlu1 %v3904_v42  ;;  %3644 = vadd.xlane.f32.xlu0 %v3602_v24  ;;  %v6651_v42 = vadd.f32 %v5195_v21, %v4955_v38  ;;  %v3427_v24 = vmul.f32 %v3426_v12, %v6572_v27  ;;  %v5520_v23 = vpop.eup %5519  ;;  %v3249_v51 = vpop.f32.mrf.mxu1  ;;  %v3416_v27 = vmul.f32 -0.5, %v6616_v32  ;;  %vm3420_vm0 = vcmp.lt.f32.partialorder %v3419_v19, 0.0004427343 }
 0x2b7   :  { %v4965_v21 = vpop.f32.mrf.mxu0  ;;  %5527 = vlog2.f32 %v3449_v5  ;;  %v3433_v18 = vmul.f32 0.6931472, %v5520_v23  ;;  %v3494_v12 = vadd.f32 1.0, %v6659_v43  ;;  %v6674_v60 = vadd.f32 %v4958_v47, %v3249_v51 }
 0x2b8   :  { %v3430_v41 = vsel %vm3429_vm13, %v3427_v24, %v3424_v55  ;;  %v3467_v17 = vadd.f32 1.0, %v6651_v42  ;;  %v5199_v7 = vpop.f32.mrf.mxu1  ;;  %v4961_v55 = vadd.f32 %v6625_v59, %v6613_v6  ;;  %v3462_v24 = vadd.f32 1.0, %v3461_v39 }
 0x2b9   :  { %v3606_v16 = vmul.f32 %v6474_v36, %v3430_v41  ;;  %v5522_v38 = vpop.eup %5521  ;;  %v3913_v33 = vmul.f32 %v6499_v0, %v3430_v41  ;;  %v3476_v40 = vadd.f32 1.0, %v6674_v60  ;;  %v3455_v39 = vand.u32 2147483647, %v6648_v30 }
 0x2ba   :  { %3951 = vadd.xlane.f32.xlu1 %v3909_v31  ;;  %3640 = vadd.xlane.f32.xlu0 %v3600_v61  ;;  %v3409_v31 = vmul.f32 %v3408_v25, %v6582_v8  ;;  %v3435_v61 = vadd.f32 1.0, %v3434_v35  ;;  %v4966_v8 = vpop.f32.mrf.mxu0  ;;  %5529 = vlog2.f32 %v3467_v17  ;;  %v3415_v50 = vmul.f32 0.6931472, %v5522_v38  ;;  %v3252_v11 = vpop.f32.mrf.mxu1 }
 0x2bb   :  { %v4967_v3 = vadd.f32 %v4966_v8, %v4965_v21  ;;  %5531 = vlog2.f32 %v3494_v12  ;;  %v6684_v6 = vadd.f32 %v4961_v55, %v3252_v11  ;;  %v3463_v51 = vmul.f32 %v3462_v24, %v6619_v58 }
 0x2bc   :  { %v3412_v10 = vsel %vm3411_vm14, %v3409_v31, %v3406_v20  ;;  %v3436_v56 = vmul.f32 %v3435_v61, %v6602_v34  ;;  %v3443_v34 = vmul.f32 -0.5, %v6636_v62  ;;  %v5202_v20 = vpop.f32.mrf.mxu1  ;;  %v3446_v61 = vand.u32 2147483647, %v6636_v62 }
 0x2bd   :  { %v3911_v45 = vmul.f32 %v6541_v48, %v3412_v10  ;;  %v3604_v25 = vmul.f32 %v6524_v37, %v3412_v10  ;;  %v6687_v23 = vadd.f32 %v5199_v7, %v4967_v3  ;;  %5533 = vlog2.f32 %v3476_v40 }
 0x2be   :  { %3642 = vadd.xlane.f32.xlu1 %v3601_v52  ;;  %3947 = vadd.xlane.f32.xlu0 %v3907_v29  ;;  %v3417_v52 = vadd.f32 1.0, %v3416_v27  ;;  %v5524_v29 = vpop.eup %5523  ;;  %v3439_v26 = vsel %vm3438_vm15, %v3436_v56, %v3433_v18  ;;  %v3444_v21 = vadd.f32 1.0, %v3443_v34  ;;  %v3265_v10 = vpop.f32.mrf.mxu1  ;;  %v3470_v18 = vmul.f32 -0.5, %v6651_v42 }
 0x2bf   :  { %v3460_v5 = vmul.f32 0.6931472, %v5524_v29  ;;  %v3914_v31 = vmul.f32 %v6494_v44, %v3439_v26  ;;  %vm3447_vm2 = vcmp.lt.f32.partialorder %v3446_v61, 0.0004427343  ;;  %v3503_v12 = vadd.f32 1.0, %v6687_v23 }
 0x2c0   :  { %v3418_v35 = vmul.f32 %v3417_v52, %v6616_v32  ;;  %v3452_v32 = vmul.f32 -0.5, %v6648_v30  ;;  %v3445_v38 = vmul.f32 %v3444_v21, %v6636_v62  ;;  %v3471_v19 = vadd.f32 1.0, %v3470_v18 }
 0x2c1   :  { %v5526_v41 = vpop.eup %5525  ;;  %vm3456_vm3 = vcmp.lt.f32.partialorder %v3455_v39, 0.0004427343  ;;  %v3473_v3 = vand.u32 2147483647, %v6651_v42  ;;  %v6710_v11 = vadd.f32 %v6394_v46, %v3265_v10  ;;  %v3491_v39 = vand.u32 2147483647, %v6684_v6 }
 0x2c2   :  { %3949 = vadd.xlane.f32.xlu1 %v3908_v13  ;;  %3646 = vadd.xlane.f32.xlu0 %v3603_v22  ;;  %v3607_v13 = vmul.f32 %v6557_v1, %v3439_v26  ;;  %v3464_v22 = vand.u32 2147483647, %v6619_v58  ;;  %v3421_v59 = vsel %vm3420_vm0, %v3418_v35, %v3415_v50  ;;  %v3442_v15 = vmul.f32 0.6931472, %v5526_v41 }
 0x2c3   :  { %v3912_v27 = vmul.f32 %v6519_v28, %v3421_v59  ;;  %v6696_v58 = vadd.f32 %v5202_v20, %v6402_v53  ;;  %v3453_v47 = vadd.f32 1.0, %v3452_v32  ;;  %v3605_v8 = vmul.f32 %v6577_v54, %v3421_v59 }
 0x2c4   :  { %vm3465_vm1 = vcmp.lt.f32.partialorder %v3464_v22, 0.0004427343  ;;  %v5528_v17 = vpop.eup %5527  ;;  %v3448_v56 = vsel %vm3447_vm2, %v3445_v38, %v3442_v15  ;;  %v3497_v53 = vmul.f32 -0.5, %v6659_v43  ;;  %vm3474_vm4 = vcmp.lt.f32.partialorder %v3473_v3, 0.0004427343 }
 0x2c5   :  { %v3451_v52 = vmul.f32 0.6931472, %v5528_v17  ;;  %v3530_v62 = vadd.f32 1.0, %v6696_v58  ;;  %v3608_v55 = vmul.f32 %v6524_v37, %v3448_v56  ;;  %v3915_v40 = vmul.f32 %v6541_v48, %v3448_v56 }
 0x2c6   :  { %3652 = vadd.xlane.f32.xlu1 %v3606_v16  ;;  %3953 = vadd.xlane.f32.xlu0 %v3910_v2  ;;  %v3485_v16 = vadd.f32 1.0, %v6684_v6  ;;  %v3466_v2 = vsel %vm3465_vm1, %v3463_v51, %v3460_v5  ;;  %v3500_v59 = vand.u32 2147483647, %v6659_v43  ;;  %v3512_v46 = vadd.f32 1.0, %v6710_v11 }
 0x2c7   :  { %v3610_v7 = vmul.f32 %v6474_v36, %v3466_v2  ;;  %v5530_v29 = vpop.eup %5529  ;;  %v3917_v50 = vmul.f32 %v6499_v0, %v3466_v2  ;;  %vm3492_vm7 = vcmp.lt.f32.partialorder %v3491_v39, 0.0004427343  ;;  %vm3731_vm1 = vcmask 130112  }
 0x2c8   :  { %5535 = vlog2.f32 %v3485_v16  ;;  %v5532_v26 = vpop.eup %5531  ;;  %v3469_v35 = vmul.f32 0.6931472, %v5530_v29  ;;  %vm3501_vm5 = vcmp.lt.f32.partialorder %v3500_v59, 0.0004427343  ;;  %vm3738_vm2 = vcmask 195712  }
 0x2c9   :  { %5537 = vlog2.f32 %v3503_v12  ;;  %v3496_v20 = vmul.f32 0.6931472, %v5532_v26 }
 0x2ca   :  { %3959 = vadd.xlane.f32.xlu1 %v3913_v33  ;;  %3955 = vadd.xlane.f32.xlu0 %v3911_v45  ;;  %v5203_v33 = vpop.f32.mrf.mxu1  ;;  %v3454_v45 = vmul.f32 %v3453_v47, %v6648_v30  ;;  %v3479_v30 = vmul.f32 -0.5, %v6674_v60  ;;  %5539 = vlog2.f32 %v3530_v62  ;;  %v5534_v32 = vpop.eup %5533 }
 0x2cb   :  { %v6723_v21 = vadd.f32 %v5203_v33, %v6406_v57  ;;  %5541 = vlog2.f32 %v3512_v46  ;;  %v3478_v17 = vmul.f32 0.6931472, %v5534_v32  ;;  %v3506_v57 = vmul.f32 -0.5, %v6687_v23 }
 0x2cc   :  { %v3457_v34 = vsel %vm3456_vm3, %v3454_v45, %v3451_v52  ;;  %v3268_v24 = vpop.f32.mrf.mxu1  ;;  %vm3745_vm3 = vcmask 261312  }
 0x2cd   :  { %v3609_v22 = vmul.f32 %v6577_v54, %v3457_v34  ;;  %v6719_v5 = vadd.f32 %v6398_v49, %v3268_v24  ;;  %v3916_v61 = vmul.f32 %v6519_v28, %v3457_v34  ;;  %v3482_v49 = vand.u32 2147483647, %v6674_v60 }
 0x2ce   :  { %3648 = vadd.xlane.f32.xlu1 %v3604_v25  ;;  %3654 = vadd.xlane.f32.xlu0 %v3607_v13  ;;  %v3472_v25 = vmul.f32 %v3471_v19, %v6651_v42  ;;  %v3498_v13 = vadd.f32 1.0, %v3497_v53  ;;  %v5206_v51 = vpop.f32.mrf.mxu1  ;;  %v3488_v42 = vmul.f32 -0.5, %v6684_v6  ;;  %v3539_v12 = vadd.f32 1.0, %v6723_v21 }
 0x2cf   :  { %v3521_v2 = vadd.f32 1.0, %v6719_v5  ;;  %vm3483_vm6 = vcmp.lt.f32.partialorder %v3482_v49, 0.0004427343  ;;  %v3507_v62 = vadd.f32 1.0, %v3506_v57 }
 0x2d0   :  { %v3475_v41 = vsel %vm3474_vm4, %v3472_v25, %v3469_v35  ;;  %v3281_v18 = vpop.f32.mrf.mxu1  ;;  %v3489_v47 = vadd.f32 1.0, %v3488_v42  ;;  %vm3880_vm4 = vcmask 1041409  }
 0x2d1   :  { %v3611_v16 = vmul.f32 %v6557_v1, %v3475_v41  ;;  %5543 = vlog2.f32 %v3521_v2  ;;  %v3508_v24 = vmul.f32 %v3507_v62, %v6687_v23 }
 0x2d2   :  { %3957 = vadd.xlane.f32.xlu1 %v3912_v27  ;;  %3961 = vadd.xlane.f32.xlu0 %v3914_v31  ;;  %v3499_v27 = vmul.f32 %v3498_v13, %v6659_v43  ;;  %v3480_v31 = vadd.f32 1.0, %v3479_v30  ;;  %v6732_v43 = vadd.f32 %v5206_v51, %v6424_v9  ;;  %v5207_v33 = vpop.f32.mrf.mxu1  ;;  %v3533_v9 = vmul.f32 -0.5, %v6696_v58 }
 0x2d3   :  { %v3490_v53 = vmul.f32 %v3489_v47, %v6684_v6  ;;  %5545 = vlog2.f32 %v3539_v12  ;;  %v3515_v6 = vmul.f32 -0.5, %v6710_v11 }
 0x2d4   :  { %v3502_v15 = vsel %vm3501_vm5, %v3499_v27, %v3496_v20  ;;  %v3481_v38 = vmul.f32 %v3480_v31, %v6674_v60  ;;  %v3566_v60 = vadd.f32 1.0, %v6732_v43  ;;  %v3284_v35 = vpop.f32.mrf.mxu1  ;;  %v3534_v30 = vadd.f32 1.0, %v3533_v9 }
 0x2d5   :  { %v5536_v10 = vpop.eup %5535  ;;  %v3921_v19 = vmul.f32 %v6499_v0, %v3502_v15  ;;  %v6759_v20 = vadd.f32 %v5207_v33, %v6428_v14  ;;  %v3516_v51 = vadd.f32 1.0, %v3515_v6  ;;  %v3542_v14 = vmul.f32 -0.5, %v6723_v21 }
 0x2d6   :  { %3660 = vadd.xlane.f32.xlu1 %v3610_v7  ;;  %3650 = vadd.xlane.f32.xlu0 %v3605_v8  ;;  %v3614_v7 = vmul.f32 %v6474_v36, %v3502_v15  ;;  %v3918_v8 = vmul.f32 %v6494_v44, %v3475_v41  ;;  %v3484_v56 = vsel %vm3483_vm6, %v3481_v38, %v3478_v17  ;;  %v3487_v52 = vmul.f32 0.6931472, %v5536_v10  ;;  %v5538_v29 = vpop.eup %5537 }
 0x2d7   :  { %v5540_v45 = vpop.eup %5539  ;;  %v3612_v26 = vmul.f32 %v6524_v37, %v3484_v56  ;;  %v3505_v34 = vmul.f32 0.6931472, %v5538_v29  ;;  %5547 = vlog2.f32 %v3566_v60  ;;  %v3919_v13 = vmul.f32 %v6541_v48, %v3484_v56 }
 0x2d8   :  { %v3493_v3 = vsel %vm3492_vm7, %v3490_v53, %v3487_v52  ;;  %v3532_v46 = vmul.f32 0.6931472, %v5540_v45  ;;  %v5542_v41 = vpop.eup %5541  ;;  %v3535_v32 = vmul.f32 %v3534_v30, %v6696_v58  ;;  %v3527_v10 = vand.u32 2147483647, %v6719_v5 }
 0x2d9   :  { %v3613_v25 = vmul.f32 %v6577_v54, %v3493_v3  ;;  %v3920_v42 = vmul.f32 %v6519_v28, %v3493_v3  ;;  %v3545_v52 = vand.u32 2147483647, %v6723_v21  ;;  %v3572_v45 = vand.u32 2147483647, %v6732_v43 }
 0x2da   :  { %3967 = vadd.xlane.f32.xlu1 %v3917_v50  ;;  %3656 = vadd.xlane.f32.xlu0 %v3608_v55  ;;  %v3509_v50 = vand.u32 2147483647, %v6687_v23  ;;  %v6746_v55 = vadd.f32 %v6416_v63, %v3281_v18  ;;  %v3524_v23 = vmul.f32 -0.5, %v6719_v5  ;;  %v3575_v18 = vadd.f32 1.0, %v6759_v20 }
 0x2db   :  { %vm3528_vm11 = vcmp.lt.f32.partialorder %v3527_v10, 0.0004427343  ;;  %vm3546_vm12 = vcmp.lt.f32.partialorder %v3545_v52, 0.0004427343  ;;  %vm3573_vm13 = vcmp.lt.f32.partialorder %v3572_v45, 0.0004427343 }
 0x2dc   :  { %vm3510_vm8 = vcmp.lt.f32.partialorder %v3509_v50, 0.0004427343  ;;  %v3548_v63 = vadd.f32 1.0, %v6746_v55  ;;  %v3525_v2 = vadd.f32 1.0, %v3524_v23  ;;  %v3551_v9 = vmul.f32 -0.5, %v6746_v55 }
 0x2dd   :  { %v3511_v59 = vsel %vm3510_vm8, %v3508_v24, %v3505_v34  ;;  %v3554_v24 = vand.u32 2147483647, %v6746_v55  ;;  %vm3882_vm5 = vcmask 1042434   ;;  %vm3884_vm6 = vcmask 1043459  }
 0x2de   :  { %3658 = vadd.xlane.f32.xlu1 %v3609_v22  ;;  %3963 = vadd.xlane.f32.xlu0 %v3915_v40  ;;  %v3536_v22 = vand.u32 2147483647, %v6696_v58  ;;  %v6755_v40 = vadd.f32 %v6420_v4, %v3284_v35  ;;  %v3615_v27 = vmul.f32 %v6557_v1, %v3511_v59  ;;  %v3518_v4 = vand.u32 2147483647, %v6710_v11  ;;  %v5544_v49 = vpop.eup %5543 }
 0x2df   :  { %5549 = vlog2.f32 %v3548_v63  ;;  %v3517_v58 = vmul.f32 %v3516_v51, %v6710_v11  ;;  %v3922_v17 = vmul.f32 %v6494_v44, %v3511_v59  ;;  %v3523_v38 = vmul.f32 0.6931472, %v5544_v49 }
 0x2e0   :  { %vm3537_vm9 = vcmp.lt.f32.partialorder %v3536_v22, 0.0004427343  ;;  %v3557_v31 = vadd.f32 1.0, %v6755_v40  ;;  %vm3519_vm10 = vcmp.lt.f32.partialorder %v3518_v4, 0.0004427343  ;;  %v5546_v47 = vpop.eup %5545  ;;  %v3526_v11 = vmul.f32 %v3525_v2, %v6719_v5 }
 0x2e1   :  { %v3541_v33 = vmul.f32 0.6931472, %v5546_v47  ;;  %v3560_v3 = vmul.f32 -0.5, %v6755_v40  ;;  %v3552_v35 = vadd.f32 1.0, %v3551_v9  ;;  %v3578_v22 = vmul.f32 -0.5, %v6759_v20 }
 0x2e2   :  { %3965 = vadd.xlane.f32.xlu1 %v3916_v61  ;;  %3662 = vadd.xlane.f32.xlu0 %v3611_v16  ;;  %v3538_v61 = vsel %vm3537_vm9, %v3535_v32, %v3532_v46  ;;  %v3514_v16 = vmul.f32 0.6931472, %v5542_v41  ;;  %5551 = vlog2.f32 %v3557_v31  ;;  %v3529_v29 = vsel %vm3528_vm11, %v3526_v11, %v3523_v38 }
 0x2e3   :  { %v3618_v15 = vmul.f32 %v6474_v36, %v3538_v61  ;;  %v3925_v12 = vmul.f32 %v6499_v0, %v3538_v61  ;;  %5553 = vlog2.f32 %v3575_v18  ;;  %v3617_v5 = vmul.f32 %v6577_v54, %v3529_v29 }
 0x2e4   :  { %v3520_v57 = vsel %vm3519_vm10, %v3517_v58, %v3514_v16  ;;  %v5548_v39 = vpop.eup %5547  ;;  %v3553_v63 = vmul.f32 %v3552_v35, %v6746_v55  ;;  %v3561_v59 = vadd.f32 1.0, %v3560_v3  ;;  %vm3555_vm14 = vcmp.lt.f32.partialorder %v3554_v24, 0.0004427343 }
 0x2e5   :  { %v3616_v56 = vmul.f32 %v6524_v37, %v3520_v57  ;;  %v3923_v62 = vmul.f32 %v6541_v48, %v3520_v57  ;;  %v3563_v41 = vand.u32 2147483647, %v6755_v40  ;;  %v3720_v2 = vlaneseq }
 0x2e6   :  { %3668 = vadd.xlane.f32.xlu1 %v3614_v7  ;;  %3969 = vadd.xlane.f32.xlu0 %v3918_v8  ;;  %v3569_v7 = vmul.f32 -0.5, %v6732_v43  ;;  %v3543_v8 = vadd.f32 1.0, %v3542_v14  ;;  %vm3886_vm7 = vcmask 1044484   ;;  %vm3888_vm8 = vcmask 1045509  }
 0x2e7   :  { %vm3564_vm15 = vcmp.lt.f32.partialorder %v3563_v41, 0.0004427343  ;;  %vm3890_vm9 = vcmask 1046534   ;;  %vm3892_vm10 = vcmask 1047559   ;;  %vm3895_vm11 = vcmask 261120  }
 0x2e8   :  { %v3544_v60 = vmul.f32 %v3543_v8, %v6723_v21  ;;  %v3570_v53 = vadd.f32 1.0, %v3569_v7  ;;  %v3924_v21 = vmul.f32 %v6519_v28, %v3529_v29 }
 0x2ea   :  { %3975 = vadd.xlane.f32.xlu1 %v3921_v19  ;;  %3664 = vadd.xlane.f32.xlu0 %v3612_v26  ;;  %v3547_v19 = vsel %vm3546_vm12, %v3544_v60, %v3541_v33  ;;  %v3568_v26 = vmul.f32 0.6931472, %v5548_v39  ;;  %v3571_v34 = vmul.f32 %v3570_v53, %v6732_v43  ;;  %vm4190_vm12 = vcmask 7168  }
 0x2eb   :  { %v3619_v6 = vmul.f32 %v6557_v1, %v3547_v19  ;;  %v3926_v46 = vmul.f32 %v6494_v44, %v3547_v19 }
 0x2ec   :  { %v5550_v50 = vpop.eup %5549  ;;  %v3574_v30 = vsel %vm3573_vm13, %v3571_v34, %v3568_v26  ;;  %vm4192_vm13 = vcmask 15360  }
 0x2ed   :  { %v3622_v43 = vmul.f32 %v6474_v36, %v3574_v30  ;;  %v3929_v4 = vmul.f32 %v6499_v0, %v3574_v30  ;;  %v3581_v36 = vand.u32 2147483647, %v6759_v20 }
 0x2ee   :  { %3666 = vadd.xlane.f32.xlu1 %v3613_v25  ;;  %3971 = vadd.xlane.f32.xlu0 %v3919_v13  ;;  %v3550_v25 = vmul.f32 0.6931472, %v5550_v50 }
 0x2ef   :  { %v5552_v13 = vpop.eup %5551  ;;  %vm3582_vm0 = vcmp.lt.f32.partialorder %v3581_v36, 0.0004427343 }
 0x2f0   :  { %v3556_v23 = vsel %vm3555_vm14, %v3553_v63, %v3550_v25  ;;  %v3559_v32 = vmul.f32 0.6931472, %v5552_v13  ;;  %v5554_v51 = vpop.eup %5553 }
 0x2f1   :  { %v3620_v55 = vmul.f32 %v6524_v37, %v3556_v23  ;;  %v3577_v61 = vmul.f32 0.6931472, %v5554_v51  ;;  %v3927_v14 = vmul.f32 %v6541_v48, %v3556_v23  ;;  %v3723_v48 = vshrl.u32 %v3720_v2, 7 }
 0x2f2   :  { %3973 = vadd.xlane.f32.xlu1 %v3920_v42  ;;  %3670 = vadd.xlane.f32.xlu0 %v3615_v27  ;;  %v3562_v42 = vmul.f32 %v3561_v59, %v6755_v40  ;;  %v3579_v27 = vadd.f32 1.0, %v3578_v22 }
 0x2f4   :  { %v3565_v31 = vsel %vm3564_vm15, %v3562_v42, %v3559_v32  ;;  %v3580_v16 = vmul.f32 %v3579_v27, %v6759_v20  ;;  %v3721_v20 = vand.u32 127, %v3720_v2 }
 0x2f5   :  { %v3621_v49 = vmul.f32 %v6577_v54, %v3565_v31  ;;  %v3928_v0 = vmul.f32 %v6519_v28, %v3565_v31 }
 0x2f6   :  { %3676 = vadd.xlane.f32.xlu1 %v3618_v15  ;;  %3977 = vadd.xlane.f32.xlu0 %v3922_v17  ;;  %v3583_v40 = vsel %vm3582_vm0, %v3580_v16, %v3577_v61  ;;  %v3726_v10 = vadd.s32 4294967288, %v3721_v20  ;;  %v3740_v18 = vadd.s32 4294967272, %v3721_v20  ;;  %v3733_v57 = vadd.s32 4294967280, %v3721_v20 }
 0x2f7   :  { %v3623_v37 = vmul.f32 %v6557_v1, %v3583_v40  ;;  %v3930_v58 = vmul.f32 %v6494_v44, %v3583_v40  ;;  %v6806_v1 = vsub.s32 %v3721_v20, %v3723_v48 }
 0x2f8   :  { %v6802_v7 = vsub.s32 %v3726_v10, %v3723_v48  ;;  %v6804_v28 = vsub.s32 %v3740_v18, %v3723_v48  ;;  %v6808_v11 = vsub.s32 %v3733_v57, %v3723_v48 }
 0x2fa   :  { %3983 = vadd.xlane.f32.xlu1 %v3925_v12  ;;  %3672 = vadd.xlane.f32.xlu0 %v3616_v56 }
 0x2fe   :  { %3674 = vadd.xlane.f32.xlu1 %v3617_v5  ;;  %3979 = vadd.xlane.f32.xlu0 %v3923_v62 }
 0x302   :  { %3981 = vadd.xlane.f32.xlu1 %v3924_v21  ;;  %3678 = vadd.xlane.f32.xlu0 %v3619_v6 }
 0x306   :  { %3684 = vadd.xlane.f32.xlu1 %v3622_v43  ;;  %3985 = vadd.xlane.f32.xlu0 %v3926_v46 }
 0x30a   :  { %3991 = vadd.xlane.f32.xlu1 %v3929_v4  ;;  %3680 = vadd.xlane.f32.xlu0 %v3620_v55 }
 0x30e   :  { %3682 = vadd.xlane.f32.xlu1 %v3621_v49  ;;  %3987 = vadd.xlane.f32.xlu0 %v3927_v14 }
 0x312   :  { %3989 = vadd.xlane.f32.xlu1 %v3928_v0  ;;  %3686 = vadd.xlane.f32.xlu0 %v3623_v37 }
 0x316   :  { %3993 = vadd.xlane.f32.xlu1 %v3930_v58 }
 0x31f   :  { %v3629_v15 = vpop.xlane.xlu0 %3628 }
 0x320   :  { %v3737_v26 = vrot.slane %v3629_v15, %v6808_v11 }
 0x323   :  { %v3938_v17 = vpop.xlane.xlu1 %3937  ;;  %v3936_v54 = vpop.xlane.xlu0 %3935 }
 0x324   :  { %v4039_v56 = vrot.slane %v3936_v54, %v6808_v11  ;;  %v4044_v52 = vrot.slane %v3938_v17, %v6804_v28 }
 0x327   :  { %v3934_v38 = vpop.xlane.xlu1 %3933  ;;  %v3625_v47 = vpop.xlane.xlu0 %3624 }
 0x328   :  { %v4034_v39 = vrot.slane %v3934_v38, %v6802_v7  ;;  %v3725_v45 = vrot.slane %v3625_v47, %v6806_v1 }
 0x32b   :  { %v3637_v44 = vpop.xlane.xlu1 %3636  ;;  %v3932_v8 = vpop.xlane.xlu0 %3931 }
 0x32c   :  { %v4030_v12 = vrot.slane %v3932_v8, %v6806_v1  ;;  %v3759_v22 = vrot.slane %v3637_v44, %v6808_v11 }
 0x32e   :  { %v4035_v29 = vsel %vm3731_vm1, %v4034_v39, %v4030_v12 }
 0x32f   :  { %v4040_v33 = vsel %vm3738_vm2, %v4039_v56, %v4035_v29  ;;  %v3944_v9 = vpop.xlane.xlu1 %3943  ;;  %v3631_v60 = vpop.xlane.xlu0 %3630 }
 0x330   :  { %v4045_v53 = vsel %vm3745_vm3, %v4044_v52, %v4040_v33  ;;  %v3744_v50 = vrot.slane %v3631_v60, %v6804_v28  ;;  %v4058_v42 = vrot.slane %v3944_v9, %v6808_v11 }
 0x333   :  { %v3633_v5 = vpop.xlane.xlu1 %3632  ;;  %v3627_v62 = vpop.xlane.xlu0 %3626 }
 0x334   :  { %v3730_v19 = vrot.slane %v3627_v62, %v6802_v7  ;;  %v3750_v25 = vrot.slane %v3633_v5, %v6806_v1 }
 0x336   :  { %v3732_v3 = vsel %vm3731_vm1, %v3730_v19, %v3725_v45 }
 0x337   :  { %v3739_v34 = vsel %vm3738_vm2, %v3737_v26, %v3732_v3  ;;  %v3639_v35 = vpop.xlane.xlu1 %3638  ;;  %v3940_v21 = vpop.xlane.xlu0 %3939 }
 0x338   :  { %v3746_v6 = vsel %vm3745_vm3, %v3744_v50, %v3739_v34  ;;  %v3764_v63 = vrot.slane %v3639_v35, %v6804_v28  ;;  %v4049_v23 = vrot.slane %v3940_v21, %v6806_v1 }
 0x33b   :  { %v3635_v24 = vpop.xlane.xlu1 %3634  ;;  %v3946_v30 = vpop.xlane.xlu0 %3945 }
 0x33c   :  { %v3754_v13 = vrot.slane %v3635_v24, %v6802_v7  ;;  %v4063_v4 = vrot.slane %v3946_v30, %v6804_v28 }
 0x33e   :  { %v3755_v59 = vsel %vm3731_vm1, %v3754_v13, %v3750_v25 }
 0x33f   :  { %v3760_v43 = vsel %vm3738_vm2, %v3759_v22, %v3755_v59  ;;  %v3942_v46 = vpop.xlane.xlu1 %3941  ;;  %v3645_v41 = vpop.xlane.xlu0 %3644 }
 0x340   :  { %v3765_v32 = vsel %vm3745_vm3, %v3764_v63, %v3760_v43  ;;  %v4053_v51 = vrot.slane %v3942_v46, %v6802_v7  ;;  %v3778_v58 = vrot.slane %v3645_v41, %v6808_v11 }
 0x341   :  { %v3881_v27 = vsel %vm3880_vm4, %v3765_v32, %v3746_v6 }
 0x342   :  { %v4054_v55 = vsel %vm3731_vm1, %v4053_v51, %v4049_v23 }
 0x343   :  { %v4059_v36 = vsel %vm3738_vm2, %v4058_v42, %v4054_v55  ;;  %v3952_v31 = vpop.xlane.xlu1 %3951  ;;  %v3641_v61 = vpop.xlane.xlu0 %3640 }
 0x344   :  { %v4064_v16 = vsel %vm3745_vm3, %v4063_v4, %v4059_v36  ;;  %v3769_v0 = vrot.slane %v3641_v61, %v6806_v1  ;;  %v4077_v18 = vrot.slane %v3952_v31, %v6808_v11 }
 0x345   :  { %v4179_v49 = vsel %vm3880_vm4, %v4064_v16, %v4045_v53 }
 0x347   :  { %v3643_v14 = vpop.xlane.xlu1 %3642  ;;  %v3948_v40 = vpop.xlane.xlu0 %3947 }
 0x348   :  { %v3773_v37 = vrot.slane %v3643_v14, %v6802_v7  ;;  %v4068_v54 = vrot.slane %v3948_v40, %v6806_v1 }
 0x34a   :  { %v3774_v2 = vsel %vm3731_vm1, %v3773_v37, %v3769_v0 }
 0x34b   :  { %v3950_v15 = vpop.xlane.xlu1 %3949  ;;  %v3779_v20 = vsel %vm3738_vm2, %v3778_v58, %v3774_v2  ;;  %v3647_v17 = vpop.xlane.xlu0 %3646 }
 0x34c   :  { %v4072_v10 = vrot.slane %v3950_v15, %v6802_v7  ;;  %v3783_v48 = vrot.slane %v3647_v17, %v6804_v28 }
 0x34e   :  { %v4073_v57 = vsel %vm3731_vm1, %v4072_v10, %v4068_v54  ;;  %v3784_v38 = vsel %vm3745_vm3, %v3783_v48, %v3779_v20 }
 0x34f   :  { %v3883_v47 = vsel %vm3882_vm5, %v3784_v38, %v3881_v27  ;;  %v3653_v44 = vpop.xlane.xlu1 %3652  ;;  %v4078_v8 = vsel %vm3738_vm2, %v4077_v18, %v4073_v57  ;;  %v3954_v39 = vpop.xlane.xlu0 %3953 }
 0x350   :  { %v4082_v12 = vrot.slane %v3954_v39, %v6804_v28  ;;  %v3797_v30 = vrot.slane %v3653_v44, %v6808_v11 }
 0x352   :  { %v4083_v56 = vsel %vm3745_vm3, %v4082_v12, %v4078_v8 }
 0x353   :  { %v4180_v52 = vsel %vm3882_vm5, %v4083_v56, %v4179_v49  ;;  %v3960_v29 = vpop.xlane.xlu1 %3959  ;;  %v3956_v33 = vpop.xlane.xlu0 %3955 }
 0x354   :  { %v4087_v62 = vrot.slane %v3956_v33, %v6806_v1  ;;  %v4096_v19 = vrot.slane %v3960_v29, %v6808_v11 }
 0x357   :  { %v3649_v9 = vpop.xlane.xlu1 %3648  ;;  %v3655_v60 = vpop.xlane.xlu0 %3654 }
 0x358   :  { %v3788_v21 = vrot.slane %v3649_v9, %v6806_v1  ;;  %v3802_v13 = vrot.slane %v3655_v60, %v6804_v28 }
 0x35b   :  { %v3958_v53 = vpop.xlane.xlu1 %3957  ;;  %v3962_v5 = vpop.xlane.xlu0 %3961 }
 0x35c   :  { %v4091_v45 = vrot.slane %v3958_v53, %v6802_v7  ;;  %v4101_v50 = vrot.slane %v3962_v5, %v6804_v28 }
 0x35e   :  { %v4092_v26 = vsel %vm3731_vm1, %v4091_v45, %v4087_v62 }
 0x35f   :  { %v4097_v3 = vsel %vm3738_vm2, %v4096_v19, %v4092_v26  ;;  %v3661_v34 = vpop.xlane.xlu1 %3660  ;;  %v3651_v35 = vpop.xlane.xlu0 %3650 }
 0x360   :  { %v4102_v6 = vsel %vm3745_vm3, %v4101_v50, %v4097_v3  ;;  %v3792_v24 = vrot.slane %v3651_v35, %v6802_v7  ;;  %v3816_v18 = vrot.slane %v3661_v34, %v6808_v11 }
 0x361   :  { %v6863_v25 = vsel %vm3884_vm6, %v4102_v6, %v4180_v52 }
 0x362   :  { %v3793_v22 = vsel %vm3731_vm1, %v3792_v24, %v3788_v21 }
 0x363   :  { %v3798_v63 = vsel %vm3738_vm2, %v3797_v30, %v3793_v22  ;;  %v3968_v59 = vpop.xlane.xlu1 %3967  ;;  %v3657_v43 = vpop.xlane.xlu0 %3656 }
 0x364   :  { %v3803_v46 = vsel %vm3745_vm3, %v3802_v13, %v3798_v63  ;;  %v3807_v54 = vrot.slane %v3657_v43, %v6806_v1  ;;  %v4115_v60 = vrot.slane %v3968_v59, %v6808_v11 }
 0x365   :  { %v3885_v41 = vsel %vm3884_vm6, %v3803_v46, %v3883_v47 }
 0x367   :  { %v3659_v23 = vpop.xlane.xlu1 %3658  ;;  %v3964_v32 = vpop.xlane.xlu0 %3963 }
 0x368   :  { %v3811_v15 = vrot.slane %v3659_v23, %v6802_v7  ;;  %v4106_v44 = vrot.slane %v3964_v32, %v6806_v1 }
 0x36a   :  { %v3812_v10 = vsel %vm3731_vm1, %v3811_v15, %v3807_v54 }
 0x36b   :  { %v3966_v51 = vpop.xlane.xlu1 %3965  ;;  %v3663_v42 = vpop.xlane.xlu0 %3662  ;;  %v3817_v8 = vsel %vm3738_vm2, %v3816_v18, %v3812_v10 }
 0x36c   :  { %v3821_v48 = vrot.slane %v3663_v42, %v6804_v28  ;;  %v4110_v57 = vrot.slane %v3966_v51, %v6802_v7 }
 0x36e   :  { %v3822_v39 = vsel %vm3745_vm3, %v3821_v48, %v3817_v8  ;;  %v4111_v56 = vsel %vm3731_vm1, %v4110_v57, %v4106_v44 }
 0x36f   :  { %v3669_v27 = vpop.xlane.xlu1 %3668  ;;  %v6870_v4 = vpop.xlane.xlu0 %3969  ;;  %v3887_v5 = vsel %vm3886_vm7, %v3822_v39, %v3885_v41  ;;  %v4116_v26 = vsel %vm3738_vm2, %v4115_v60, %v4111_v56 }
 0x370   :  { %v3835_v19 = vrot.slane %v3669_v27, %v6808_v11  ;;  %v4120_v43 = vrot.slane %v6870_v4, %v6804_v28 }
 0x373   :  { %v3976_v55 = vpop.xlane.xlu1 %3975  ;;  %v3665_v36 = vpop.xlane.xlu0 %3664 }
 0x374   :  { %v3826_v53 = vrot.slane %v3665_v36, %v6806_v1  ;;  %v4134_v13 = vrot.slane %v3976_v55, %v6808_v11 }
 0x377   :  { %v3667_v31 = vpop.xlane.xlu1 %3666  ;;  %v3972_v61 = vpop.xlane.xlu0 %3971 }
 0x378   :  { %v3830_v12 = vrot.slane %v3667_v31, %v6802_v7  ;;  %v4125_v62 = vrot.slane %v3972_v61, %v6806_v1 }
 0x37a   :  { %v3831_v50 = vsel %vm3731_vm1, %v3830_v12, %v3826_v53 }
 0x37b   :  { %v3974_v16 = vpop.xlane.xlu1 %3973  ;;  %v3671_v49 = vpop.xlane.xlu0 %3670  ;;  %v3836_v46 = vsel %vm3738_vm2, %v3835_v19, %v3831_v50 }
 0x37c   :  { %v4129_v52 = vrot.slane %v3974_v16, %v6802_v7  ;;  %v3840_v3 = vrot.slane %v3671_v49, %v6804_v28 }
 0x37e   :  { %v4130_v34 = vsel %vm3731_vm1, %v4129_v52, %v4125_v62  ;;  %v3841_v32 = vsel %vm3745_vm3, %v3840_v3, %v3836_v46 }
 0x37f   :  { %v3677_v14 = vpop.xlane.xlu1 %3676  ;;  %v6872_v40 = vpop.xlane.xlu0 %3977  ;;  %v4135_v51 = vsel %vm3738_vm2, %v4134_v13, %v4130_v34 }
 0x380   :  { %v3854_v22 = vrot.slane %v3677_v14, %v6808_v11  ;;  %v4139_v41 = vrot.slane %v6872_v40, %v6804_v28 }
 0x383   :  { %v6874_v0 = vpop.xlane.xlu1 %3983  ;;  %v3673_v37 = vpop.xlane.xlu0 %3672 }
 0x384   :  { %v3845_v45 = vrot.slane %v3673_v37, %v6806_v1  ;;  %v4153_v49 = vrot.slane %v6874_v0, %v6808_v11 }
 0x387   :  { %v3675_v58 = vpop.xlane.xlu1 %3674  ;;  %v3980_v2 = vpop.xlane.xlu0 %3979 }
 0x388   :  { %v3849_v29 = vrot.slane %v3675_v58, %v6802_v7  ;;  %v4144_v23 = vrot.slane %v3980_v2, %v6806_v1  ;;  %v4121_v58 = vsel %vm3745_vm3, %v4120_v43, %v4116_v26  ;;  %v4140_v2 = vsel %vm3745_vm3, %v4139_v41, %v4135_v51 }
 0x389   :  { %v4182_v57 = vsel %vm3886_vm7, %v4121_v58, %v6863_v25 }
 0x38a   :  { %v3850_v35 = vsel %vm3731_vm1, %v3849_v29, %v3845_v45  ;;  %v4183_v8 = vsel %vm3888_vm8, %v4140_v2, %v4182_v57 }
 0x38b   :  { %v3982_v20 = vpop.xlane.xlu1 %3981  ;;  %v3679_v17 = vpop.xlane.xlu0 %3678  ;;  %v3855_v42 = vsel %vm3738_vm2, %v3854_v22, %v3850_v35 }
 0x38c   :  { %v4148_v21 = vrot.slane %v3982_v20, %v6802_v7  ;;  %v3859_v6 = vrot.slane %v3679_v17, %v6804_v28  ;;  %v3889_v20 = vsel %vm3888_vm8, %v3841_v32, %v3887_v5 }
 0x38e   :  { %v4149_v55 = vsel %vm3731_vm1, %v4148_v21, %v4144_v23  ;;  %v3860_v36 = vsel %vm3745_vm3, %v3859_v6, %v3855_v42 }
 0x38f   :  { %v3685_v38 = vpop.xlane.xlu1 %3684  ;;  %v3986_v47 = vpop.xlane.xlu0 %3985  ;;  %v4154_v17 = vsel %vm3738_vm2, %v4153_v49, %v4149_v55 }
 0x390   :  { %v3873_v4 = vrot.slane %v3685_v38, %v6808_v11  ;;  %v4158_v31 = vrot.slane %v3986_v47, %v6804_v28 }
 0x393   :  { %v3992_v33 = vpop.xlane.xlu1 %3991  ;;  %v3681_v9 = vpop.xlane.xlu0 %3680 }
 0x394   :  { %v3864_v63 = vrot.slane %v3681_v9, %v6806_v1  ;;  %v4172_v10 = vrot.slane %v3992_v33, %v6808_v11 }
 0x397   :  { %v3683_v24 = vpop.xlane.xlu1 %3682  ;;  %v3988_v30 = vpop.xlane.xlu0 %3987 }
 0x398   :  { %v3868_v59 = vrot.slane %v3683_v24, %v6802_v7  ;;  %v4163_v14 = vrot.slane %v3988_v30, %v6806_v1  ;;  %v3891_v1 = vsel %vm3890_vm9, %v3860_v36, %v3889_v20 }
 0x39a   :  { %v3869_v27 = vsel %vm3731_vm1, %v3868_v59, %v3864_v63 }
 0x39b   :  { %v3990_v61 = vpop.xlane.xlu1 %3989  ;;  %v3687_v16 = vpop.xlane.xlu0 %3686  ;;  %v3874_v15 = vsel %vm3738_vm2, %v3873_v4, %v3869_v27 }
 0x39c   :  { %v4167_v40 = vrot.slane %v3990_v61, %v6802_v7  ;;  %v3878_v37 = vrot.slane %v3687_v16, %v6804_v28  ;;  %v4159_v7 = vsel %vm3745_vm3, %v4158_v31, %v4154_v17 }
 0x39d   :  { %v4184_v12 = vsel %vm3890_vm9, %v4159_v7, %v4183_v8 }
 0x39e   :  { %v4168_v54 = vsel %vm3731_vm1, %v4167_v40, %v4163_v14  ;;  %v3879_v0 = vsel %vm3745_vm3, %v3878_v37, %v3874_v15 }
 0x39f   :  { %v3994_v48 = vpop.xlane.xlu1 %3993  ;;  %v3893_v18 = vsel %vm3892_vm10, %v3879_v0, %v3891_v1  ;;  %v4173_v44 = vsel %vm3738_vm2, %v4172_v10, %v4168_v54 }
 0x3a0   :  { %v4177_v38 = vrot.slane %v3994_v48, %v6804_v28  ;;  %v3896_v47 = vsel %vm3895_vm11, %v3893_v18, 0.0 }
 0x3a1   :  { %3897 = vadd.xlane.f32.xlu0 %v3896_v47 }
 0x3a2   :  { %v4178_v39 = vsel %vm3745_vm3, %v4177_v38, %v4173_v44 }
 0x3a3   :  { %v4185_v11 = vsel %vm3892_vm10, %v4178_v39, %v4184_v12 }
 0x3a4   :  { %v4187_v56 = vsel %vm3895_vm11, %v4185_v11, 0.0 }
 0x3a5   :  { %4188 = vadd.xlane.f32.xlu1 %v4187_v56 }
 0x42a   :  { %v3898_v25 = vpop.xlane.xlu0 %3897 }
 0x42e   :  { %v4189_v28 = vpop.xlane.xlu1 %4188 }
 0x42f   :  { %v4191_v52 = vsel %vm4190_vm12, %v3898_v25, %v4189_v28 }
 0x430   :  { %v4193_v29 = vsel %vm4192_vm13, %v4191_v52, -inf }
 0x431   :  { %4194 = vmax.xlane.f32.xlu0 %v4193_v29 }
 0x4ba   :  { %v4195_v33 = vpop.xlane.xlu0 %4194 }
 0x4bb   :  { %v4196_v9 = vsub.f32 %v4191_v52, %v4195_v33 }
 0x4bd   :  { %v4197_v60 = vmul.f32 1.442695, %v4196_v9 }
 0x4bf   :  { %5555 = vpow2.f32 %v4197_v60 }
 0x4cc   :  { %v5556_v53 = vpop.eup %5555 }
 0x4cd   :  { %v4199_v5 = vsel %vm4192_vm13, %v5556_v53, 0.0 }
 0x4ce   :  { %4200 = vadd.xlane.f32.xlu1 %v4199_v5 }
 0x557   :  { %v4201_v62 = vpop.xlane.xlu1 %4200 }
 0x558   :  { %5557 = vrcp.f32 %v4201_v62 }
 0x565   :  { %v5558_v45 = vpop.eup %5557 }
 0x566   :  { %v4203_v19 = vmul.f32 %v5558_v45, %v5556_v53 }
 0x568   :  { %v4204_v26 = vsel %vm4192_vm13, %v4203_v19, 0.0 }
 0x569   :  { %4205 = vst [vmem:[%s6956_s4] sm:$0xff] %v4204_v26 }

</bundles_post_ra>
